<compile_context>
chip_gen: v5e
topology: v5e:2x2
jax: 0.10.0
libtpu: 0.0.40
codegen_flags: <defaults>
</compile_context>

<pallas_src>
import functools
from math import sqrt

import jax
import jax.numpy as jnp
from jax.experimental import pallas as pl
from jax.experimental.pallas import tpu as pltpu


def _round_up(x, m):
    return (x + m - 1) // m * m


def _equal_conv2d_kernel(x_ref, w_ref, b_ref, o_ref, *, tile_h, kh, kw, wo_p, scale):
    """One (batch, row-tile) step of the convolution.

    x_ref : (Hp, Wp, Cin_p)         padded input image (resident per batch elem)
    w_ref : (kh*kw, Cin_p, Cout_p)  un-scaled weights, flattened over (kh, kw)
    b_ref : (1, Cout_p)             bias
    o_ref : (tile_h, wo_p, Cout_p)  output tile
    """
    r = pl.program_id(1)
    row0 = pl.multiple_of(r * tile_h, tile_h)
    cin_p = x_ref.shape[-1]
    cout_p = o_ref.shape[-1]
    m = tile_h * wo_p

    acc = jnp.zeros((m, cout_p), jnp.float32)
    # Static kh*kw tap loop (fully unrolled at trace time).
    for i in range(kh):
        for j in range(kw):
            # Shifted input slab for kernel tap (i, j):
            # rows [row0+i, row0+i+tile_h), cols [j, j+wo_p).
            x_ij = x_ref[pl.ds(row0 + i, tile_h), pl.ds(j, wo_p), :]
            acc = acc + jnp.dot(
                x_ij.reshape(m, cin_p),
                w_ref[i * kw + j],
                preferred_element_type=jnp.float32,
            )
    # Equal-LR scale + bias epilogue, fused once per tile.
    out = acc * scale + b_ref[...]
    o_ref[...] = out.reshape(tile_h, wo_p, cout_p).astype(o_ref.dtype)


def equal_conv2d(x, weight_orig, bias, *, padding):
    """x: (N, C_in, H, W); weight_orig: (C_out, C_in, kH, kW); bias: (C_out,)."""
    N, C_in, H, W = x.shape
    C_out, _, kH, kW = weight_orig.shape
    fan_in = C_in * kH * kW
    scale = sqrt(2.0 / fan_in)

    Ho = H + 2 * padding - kH + 1
    Wo = W + 2 * padding - kW + 1

    # --- alignment / tiling choices ---------------------------------------
    Cin_p = _round_up(C_in, 8)          # tidy sublane count for the weight K dim
    Cout_p = _round_up(C_out, 128)      # lane-dense output / full MXU N width
    Wo_p = _round_up(Wo, 8)             # sublane-aligned output width
    # Aim for ~1024 matmul rows per grid step (amortize ~0.35us/step overhead),
    # bounded so the double-buffered output tile stays small enough for every
    # TPU generation (v7x has only 64 MiB of VMEM per core).
    tile_h = max(1, min(Ho, max(1, 1024 // Wo_p)))
    max_tile_h = max(1, (4 * 1024 * 1024) // (Wo_p * Cout_p * 4))
    tile_h = min(tile_h, max_tile_h)
    Ho_p = _round_up(Ho, tile_h)

    Hp = Ho_p + kH - 1                  # padded input rows needed
    Wp = Wo_p + kW - 1                  # padded input cols needed

    # NCHW -> NHWC, zero-pad spatially (conv padding + alignment slack) and channels.
    xp = jnp.transpose(x, (0, 2, 3, 1))
    xp = jnp.pad(xp, ((0, 0),
                      (padding, Hp - H - padding),
                      (padding, Wp - W - padding),
                      (0, Cin_p - C_in)))

    # OIHW -> (kH*kW, Cin_p, Cout_p), un-scaled (scale applied in-kernel).
    w = jnp.transpose(weight_orig, (2, 3, 1, 0)).reshape(kH * kW, C_in, C_out)
    w = jnp.pad(w, ((0, 0), (0, Cin_p - C_in), (0, Cout_p - C_out)))
    b = jnp.pad(bias, (0, Cout_p - C_out)).reshape(1, Cout_p)

    grid = (N, Ho_p // tile_h)

    flops = 2 * N * Ho * Wo * fan_in * C_out
    bytes_accessed = (xp.size + w.size + b.size + N * Ho_p * Wo_p * Cout_p) * 4

    # VMEM residency estimate: double-buffered input image + resident weights
    # and bias + double-buffered output tile, with headroom for the accumulator.
    vmem_need = (2 * Hp * Wp * Cin_p
                 + kH * kW * Cin_p * Cout_p + Cout_p
                 + 2 * tile_h * Wo_p * Cout_p
                 + 2 * tile_h * Wo_p * Cout_p) * 4
    vmem_limit = min(max(int(vmem_need * 1.5) + (4 << 20), 16 << 20), 56 << 20)

    out = pl.pallas_call(
        functools.partial(_equal_conv2d_kernel, tile_h=tile_h, kh=kH, kw=kW,
                          wo_p=Wo_p, scale=scale),
        out_shape=jax.ShapeDtypeStruct((N, Ho_p, Wo_p, Cout_p), x.dtype),
        grid_spec=pltpu.PrefetchScalarGridSpec(
            num_scalar_prefetch=0,
            grid=grid,
            in_specs=[
                # Whole padded image per batch element; block index depends only
                # on n, so it is DMA'd once per image and stays resident across
                # the inner row-tile axis.
                pl.BlockSpec((None, Hp, Wp, Cin_p), lambda n, r: (n, 0, 0, 0)),
                # Grid-invariant weight / bias blocks (stay resident in VMEM).
                pl.BlockSpec((kH * kW, Cin_p, Cout_p), lambda n, r: (0, 0, 0)),
                pl.BlockSpec((1, Cout_p), lambda n, r: (0, 0)),
            ],
            out_specs=pl.BlockSpec((None, tile_h, Wo_p, Cout_p),
                                   lambda n, r: (n, r, 0, 0)),
        ),
        compiler_params=pltpu.CompilerParams(
            dimension_semantics=("parallel", "parallel"),
            vmem_limit_bytes=vmem_limit,
        ),
        cost_estimate=pl.CostEstimate(flops=flops, transcendentals=0,
                                      bytes_accessed=bytes_accessed),
    )(xp, w, b)

    # Drop alignment padding, NHWC -> NCHW.
    out = out[:, :Ho, :Wo, :C_out]
    return jnp.transpose(out, (0, 3, 1, 2))


if __name__ == "__main__":
    # EqualConv2d(in_channels=4, out_channels=8, kernel_size=3, padding=1)
    N, C_in, H, W = 2, 4, 16, 16
    C_out, kH, kW, pad = 8, 3, 3, 1

    key = jax.random.PRNGKey(0)
    k_x, k_w = jax.random.split(key)
    x = jax.random.normal(k_x, (N, C_in, H, W), dtype=jnp.float32)
    # conv.weight.data.normal_()  /  conv.bias.data.zero_()
    weight_orig = jax.random.normal(k_w, (C_out, C_in, kH, kW), dtype=jnp.float32)
    bias = jnp.zeros((C_out,), dtype=jnp.float32)

    out = equal_conv2d(x, weight_orig, bias, padding=pad)
    out = jax.block_until_ready(out)

    # Reference: XLA conv with the same equal-LR scaling.
    scale = sqrt(2.0 / (C_in * kH * kW))
    ref = jax.lax.conv_general_dilated(
        x, weight_orig * scale, window_strides=(1, 1),
        padding=[(pad, pad), (pad, pad)],
        dimension_numbers=("NCHW", "OIHW", "NCHW"),
    ) + bias.reshape(1, C_out, 1, 1)

    assert out.shape == (N, C_out, H, W)
    assert jnp.allclose(out, ref, atol=1e-4, rtol=1e-4)

    print("KERNEL_OK")
</pallas_src>

<mosaic_0001>
module attributes {stable_mosaic.version = 11 : i64} {
  func.func @_equal_conv2d_kernel(%arg0: i32, %arg1: i32, %arg2: memref<1x18x18x8xf32, #tpu.memory_space<vmem>>, %arg3: memref<9x8x128xf32, #tpu.memory_space<vmem>>, %arg4: memref<1x128xf32, #tpu.memory_space<vmem>>, %arg5: memref<1x16x16x128xf32, #tpu.memory_space<vmem>>) attributes {dimension_semantics = [#tpu.dimension_semantics<parallel>, #tpu.dimension_semantics<parallel>], iteration_bounds = array<i64: 2, 1>, scalar_prefetch = 0 : i64, scratch_operands = 0 : i64, tpu.core_type = #tpu.core_type<tc>, window_params = [{transform_indices = @transform_0, window_bounds = array<i64: 1, 18, 18, 8>}, {pipeline_mode = #tpu.pipeline_mode<synchronous>, transform_indices = @transform_1, window_bounds = array<i64: 9, 8, 128>}, {pipeline_mode = #tpu.pipeline_mode<synchronous>, transform_indices = @transform_2, window_bounds = array<i64: 1, 128>}, {transform_indices = @transform_3, window_bounds = array<i64: 1, 16, 16, 128>}]} {
    %c16_i32 = arith.constant 16 : i32
    %0 = arith.muli %arg1, %c16_i32 : i32
    %1 = tpu.assume_multiple %0, 16 : i32
    %cst = arith.constant 0.000000e+00 : f32
    %2 = vector.broadcast %cst : f32 to vector<256x128xf32>
    %c0_i32 = arith.constant 0 : i32
    %3 = arith.addi %1, %c0_i32 : i32
    %c0 = arith.constant 0 : index
    %4 = arith.index_cast %3 : i32 to index
    %c0_0 = arith.constant 0 : index
    %c0_1 = arith.constant 0 : index
    %5 = vector.load %arg2[%c0, %4, %c0_0, %c0_1] : memref<1x18x18x8xf32, #tpu.memory_space<vmem>>, vector<1x16x16x8xf32>
    %6 = vector.shape_cast %5 : vector<1x16x16x8xf32> to vector<16x16x8xf32>
    %7 = vector.shape_cast %6 : vector<16x16x8xf32> to vector<256x8xf32>
    %c0_2 = arith.constant 0 : index
    %c0_3 = arith.constant 0 : index
    %c0_4 = arith.constant 0 : index
    %8 = vector.load %arg3[%c0_2, %c0_3, %c0_4] : memref<9x8x128xf32, #tpu.memory_space<vmem>>, vector<1x8x128xf32>
    %9 = vector.shape_cast %8 : vector<1x8x128xf32> to vector<8x128xf32>
    %cst_5 = arith.constant dense<0.000000e+00> : vector<256x128xf32>
    %10 = tpu.matmul %7, %9, %cst_5 {dimension_numbers = #tpu.dot_dimension_numbers<[1], [0], [0], [1], [0, 0, 1, 1], [], []>} : vector<256x8xf32>, vector<8x128xf32>, vector<256x128xf32> -> vector<256x128xf32>
    %11 = arith.addf %2, %10 : vector<256x128xf32>
    %c0_i32_6 = arith.constant 0 : i32
    %12 = arith.addi %1, %c0_i32_6 : i32
    %c0_7 = arith.constant 0 : index
    %13 = arith.index_cast %12 : i32 to index
    %c1 = arith.constant 1 : index
    %c0_8 = arith.constant 0 : index
    %14 = vector.load %arg2[%c0_7, %13, %c1, %c0_8] : memref<1x18x18x8xf32, #tpu.memory_space<vmem>>, vector<1x16x16x8xf32>
    %15 = vector.shape_cast %14 : vector<1x16x16x8xf32> to vector<16x16x8xf32>
    %16 = vector.shape_cast %15 : vector<16x16x8xf32> to vector<256x8xf32>
    %c1_9 = arith.constant 1 : index
    %c0_10 = arith.constant 0 : index
    %c0_11 = arith.constant 0 : index
    %17 = vector.load %arg3[%c1_9, %c0_10, %c0_11] : memref<9x8x128xf32, #tpu.memory_space<vmem>>, vector<1x8x128xf32>
    %18 = vector.shape_cast %17 : vector<1x8x128xf32> to vector<8x128xf32>
    %cst_12 = arith.constant dense<0.000000e+00> : vector<256x128xf32>
    %19 = tpu.matmul %16, %18, %cst_12 {dimension_numbers = #tpu.dot_dimension_numbers<[1], [0], [0], [1], [0, 0, 1, 1], [], []>} : vector<256x8xf32>, vector<8x128xf32>, vector<256x128xf32> -> vector<256x128xf32>
    %20 = arith.addf %11, %19 : vector<256x128xf32>
    %c0_i32_13 = arith.constant 0 : i32
    %21 = arith.addi %1, %c0_i32_13 : i32
    %c0_14 = arith.constant 0 : index
    %22 = arith.index_cast %21 : i32 to index
    %c2 = arith.constant 2 : index
    %c0_15 = arith.constant 0 : index
    %23 = vector.load %arg2[%c0_14, %22, %c2, %c0_15] : memref<1x18x18x8xf32, #tpu.memory_space<vmem>>, vector<1x16x16x8xf32>
    %24 = vector.shape_cast %23 : vector<1x16x16x8xf32> to vector<16x16x8xf32>
    %25 = vector.shape_cast %24 : vector<16x16x8xf32> to vector<256x8xf32>
    %c2_16 = arith.constant 2 : index
    %c0_17 = arith.constant 0 : index
    %c0_18 = arith.constant 0 : index
    %26 = vector.load %arg3[%c2_16, %c0_17, %c0_18] : memref<9x8x128xf32, #tpu.memory_space<vmem>>, vector<1x8x128xf32>
    %27 = vector.shape_cast %26 : vector<1x8x128xf32> to vector<8x128xf32>
    %cst_19 = arith.constant dense<0.000000e+00> : vector<256x128xf32>
    %28 = tpu.matmul %25, %27, %cst_19 {dimension_numbers = #tpu.dot_dimension_numbers<[1], [0], [0], [1], [0, 0, 1, 1], [], []>} : vector<256x8xf32>, vector<8x128xf32>, vector<256x128xf32> -> vector<256x128xf32>
    %29 = arith.addf %20, %28 : vector<256x128xf32>
    %c1_i32 = arith.constant 1 : i32
    %30 = arith.addi %1, %c1_i32 : i32
    %c0_20 = arith.constant 0 : index
    %31 = arith.index_cast %30 : i32 to index
    %c0_21 = arith.constant 0 : index
    %c0_22 = arith.constant 0 : index
    %32 = vector.load %arg2[%c0_20, %31, %c0_21, %c0_22] : memref<1x18x18x8xf32, #tpu.memory_space<vmem>>, vector<1x16x16x8xf32>
    %33 = vector.shape_cast %32 : vector<1x16x16x8xf32> to vector<16x16x8xf32>
    %34 = vector.shape_cast %33 : vector<16x16x8xf32> to vector<256x8xf32>
    %c3 = arith.constant 3 : index
    %c0_23 = arith.constant 0 : index
    %c0_24 = arith.constant 0 : index
    %35 = vector.load %arg3[%c3, %c0_23, %c0_24] : memref<9x8x128xf32, #tpu.memory_space<vmem>>, vector<1x8x128xf32>
    %36 = vector.shape_cast %35 : vector<1x8x128xf32> to vector<8x128xf32>
    %cst_25 = arith.constant dense<0.000000e+00> : vector<256x128xf32>
    %37 = tpu.matmul %34, %36, %cst_25 {dimension_numbers = #tpu.dot_dimension_numbers<[1], [0], [0], [1], [0, 0, 1, 1], [], []>} : vector<256x8xf32>, vector<8x128xf32>, vector<256x128xf32> -> vector<256x128xf32>
    %38 = arith.addf %29, %37 : vector<256x128xf32>
    %c1_i32_26 = arith.constant 1 : i32
    %39 = arith.addi %1, %c1_i32_26 : i32
    %c0_27 = arith.constant 0 : index
    %40 = arith.index_cast %39 : i32 to index
    %c1_28 = arith.constant 1 : index
    %c0_29 = arith.constant 0 : index
    %41 = vector.load %arg2[%c0_27, %40, %c1_28, %c0_29] : memref<1x18x18x8xf32, #tpu.memory_space<vmem>>, vector<1x16x16x8xf32>
    %42 = vector.shape_cast %41 : vector<1x16x16x8xf32> to vector<16x16x8xf32>
    %43 = vector.shape_cast %42 : vector<16x16x8xf32> to vector<256x8xf32>
    %c4 = arith.constant 4 : index
    %c0_30 = arith.constant 0 : index
    %c0_31 = arith.constant 0 : index
    %44 = vector.load %arg3[%c4, %c0_30, %c0_31] : memref<9x8x128xf32, #tpu.memory_space<vmem>>, vector<1x8x128xf32>
    %45 = vector.shape_cast %44 : vector<1x8x128xf32> to vector<8x128xf32>
    %cst_32 = arith.constant dense<0.000000e+00> : vector<256x128xf32>
    %46 = tpu.matmul %43, %45, %cst_32 {dimension_numbers = #tpu.dot_dimension_numbers<[1], [0], [0], [1], [0, 0, 1, 1], [], []>} : vector<256x8xf32>, vector<8x128xf32>, vector<256x128xf32> -> vector<256x128xf32>
    %47 = arith.addf %38, %46 : vector<256x128xf32>
    %c1_i32_33 = arith.constant 1 : i32
    %48 = arith.addi %1, %c1_i32_33 : i32
    %c0_34 = arith.constant 0 : index
    %49 = arith.index_cast %48 : i32 to index
    %c2_35 = arith.constant 2 : index
    %c0_36 = arith.constant 0 : index
    %50 = vector.load %arg2[%c0_34, %49, %c2_35, %c0_36] : memref<1x18x18x8xf32, #tpu.memory_space<vmem>>, vector<1x16x16x8xf32>
    %51 = vector.shape_cast %50 : vector<1x16x16x8xf32> to vector<16x16x8xf32>
    %52 = vector.shape_cast %51 : vector<16x16x8xf32> to vector<256x8xf32>
    %c5 = arith.constant 5 : index
    %c0_37 = arith.constant 0 : index
    %c0_38 = arith.constant 0 : index
    %53 = vector.load %arg3[%c5, %c0_37, %c0_38] : memref<9x8x128xf32, #tpu.memory_space<vmem>>, vector<1x8x128xf32>
    %54 = vector.shape_cast %53 : vector<1x8x128xf32> to vector<8x128xf32>
    %cst_39 = arith.constant dense<0.000000e+00> : vector<256x128xf32>
    %55 = tpu.matmul %52, %54, %cst_39 {dimension_numbers = #tpu.dot_dimension_numbers<[1], [0], [0], [1], [0, 0, 1, 1], [], []>} : vector<256x8xf32>, vector<8x128xf32>, vector<256x128xf32> -> vector<256x128xf32>
    %56 = arith.addf %47, %55 : vector<256x128xf32>
    %c2_i32 = arith.constant 2 : i32
    %57 = arith.addi %1, %c2_i32 : i32
    %c0_40 = arith.constant 0 : index
    %58 = arith.index_cast %57 : i32 to index
    %c0_41 = arith.constant 0 : index
    %c0_42 = arith.constant 0 : index
    %59 = vector.load %arg2[%c0_40, %58, %c0_41, %c0_42] : memref<1x18x18x8xf32, #tpu.memory_space<vmem>>, vector<1x16x16x8xf32>
    %60 = vector.shape_cast %59 : vector<1x16x16x8xf32> to vector<16x16x8xf32>
    %61 = vector.shape_cast %60 : vector<16x16x8xf32> to vector<256x8xf32>
    %c6 = arith.constant 6 : index
    %c0_43 = arith.constant 0 : index
    %c0_44 = arith.constant 0 : index
    %62 = vector.load %arg3[%c6, %c0_43, %c0_44] : memref<9x8x128xf32, #tpu.memory_space<vmem>>, vector<1x8x128xf32>
    %63 = vector.shape_cast %62 : vector<1x8x128xf32> to vector<8x128xf32>
    %cst_45 = arith.constant dense<0.000000e+00> : vector<256x128xf32>
    %64 = tpu.matmul %61, %63, %cst_45 {dimension_numbers = #tpu.dot_dimension_numbers<[1], [0], [0], [1], [0, 0, 1, 1], [], []>} : vector<256x8xf32>, vector<8x128xf32>, vector<256x128xf32> -> vector<256x128xf32>
    %65 = arith.addf %56, %64 : vector<256x128xf32>
    %c2_i32_46 = arith.constant 2 : i32
    %66 = arith.addi %1, %c2_i32_46 : i32
    %c0_47 = arith.constant 0 : index
    %67 = arith.index_cast %66 : i32 to index
    %c1_48 = arith.constant 1 : index
    %c0_49 = arith.constant 0 : index
    %68 = vector.load %arg2[%c0_47, %67, %c1_48, %c0_49] : memref<1x18x18x8xf32, #tpu.memory_space<vmem>>, vector<1x16x16x8xf32>
    %69 = vector.shape_cast %68 : vector<1x16x16x8xf32> to vector<16x16x8xf32>
    %70 = vector.shape_cast %69 : vector<16x16x8xf32> to vector<256x8xf32>
    %c7 = arith.constant 7 : index
    %c0_50 = arith.constant 0 : index
    %c0_51 = arith.constant 0 : index
    %71 = vector.load %arg3[%c7, %c0_50, %c0_51] : memref<9x8x128xf32, #tpu.memory_space<vmem>>, vector<1x8x128xf32>
    %72 = vector.shape_cast %71 : vector<1x8x128xf32> to vector<8x128xf32>
    %cst_52 = arith.constant dense<0.000000e+00> : vector<256x128xf32>
    %73 = tpu.matmul %70, %72, %cst_52 {dimension_numbers = #tpu.dot_dimension_numbers<[1], [0], [0], [1], [0, 0, 1, 1], [], []>} : vector<256x8xf32>, vector<8x128xf32>, vector<256x128xf32> -> vector<256x128xf32>
    %74 = arith.addf %65, %73 : vector<256x128xf32>
    %c2_i32_53 = arith.constant 2 : i32
    %75 = arith.addi %1, %c2_i32_53 : i32
    %c0_54 = arith.constant 0 : index
    %76 = arith.index_cast %75 : i32 to index
    %c2_55 = arith.constant 2 : index
    %c0_56 = arith.constant 0 : index
    %77 = vector.load %arg2[%c0_54, %76, %c2_55, %c0_56] : memref<1x18x18x8xf32, #tpu.memory_space<vmem>>, vector<1x16x16x8xf32>
    %78 = vector.shape_cast %77 : vector<1x16x16x8xf32> to vector<16x16x8xf32>
    %79 = vector.shape_cast %78 : vector<16x16x8xf32> to vector<256x8xf32>
    %c8 = arith.constant 8 : index
    %c0_57 = arith.constant 0 : index
    %c0_58 = arith.constant 0 : index
    %80 = vector.load %arg3[%c8, %c0_57, %c0_58] : memref<9x8x128xf32, #tpu.memory_space<vmem>>, vector<1x8x128xf32>
    %81 = vector.shape_cast %80 : vector<1x8x128xf32> to vector<8x128xf32>
    %cst_59 = arith.constant dense<0.000000e+00> : vector<256x128xf32>
    %82 = tpu.matmul %79, %81, %cst_59 {dimension_numbers = #tpu.dot_dimension_numbers<[1], [0], [0], [1], [0, 0, 1, 1], [], []>} : vector<256x8xf32>, vector<8x128xf32>, vector<256x128xf32> -> vector<256x128xf32>
    %83 = arith.addf %74, %82 : vector<256x128xf32>
    %cst_60 = arith.constant 0.235702261 : f32
    %84 = vector.broadcast %cst_60 : f32 to vector<256x128xf32>
    %85 = arith.mulf %83, %84 : vector<256x128xf32>
    %c0_61 = arith.constant 0 : index
    %c0_62 = arith.constant 0 : index
    %86 = vector.load %arg4[%c0_61, %c0_62] : memref<1x128xf32, #tpu.memory_space<vmem>>, vector<1x128xf32>
    %87 = vector.broadcast %86 : vector<1x128xf32> to vector<256x128xf32>
    %88 = arith.addf %85, %87 : vector<256x128xf32>
    %89 = vector.shape_cast %88 : vector<256x128xf32> to vector<16x16x128xf32>
    %c0_63 = arith.constant 0 : index
    %c0_64 = arith.constant 0 : index
    %c0_65 = arith.constant 0 : index
    %c0_66 = arith.constant 0 : index
    %90 = vector.load %arg5[%c0_63, %c0_64, %c0_65, %c0_66] : memref<1x16x16x128xf32, #tpu.memory_space<vmem>>, vector<1x16x16x128xf32>
    %91 = vector.shape_cast %90 : vector<1x16x16x128xf32> to vector<16x16x128xf32>
    %92 = vector.shape_cast %89 : vector<16x16x128xf32> to vector<1x16x16x128xf32>
    tpu.vector_store %arg5[%c0_63, %c0_64, %c0_65, %c0_66], %92 {strides = array<i32>} : memref<1x16x16x128xf32, #tpu.memory_space<vmem>>, vector<1x16x16x128xf32>,
    return
  }
  func.func @transform_0(%arg0: i32, %arg1: i32) -> (i32, i32, i32, i32) {
    %c0_i32 = arith.constant 0 : i32
    %c0_i32_0 = arith.constant 0 : i32
    %c0_i32_1 = arith.constant 0 : i32
    %c0_i32_2 = arith.constant 0 : i32
    return %arg0, %c0_i32, %c0_i32_0, %c0_i32_1 : i32, i32, i32, i32
  }
  func.func @transform_1(%arg0: i32, %arg1: i32) -> (i32, i32, i32) {
    %c0_i32 = arith.constant 0 : i32
    %c0_i32_0 = arith.constant 0 : i32
    %c0_i32_1 = arith.constant 0 : i32
    %c0_i32_2 = arith.constant 0 : i32
    return %c0_i32, %c0_i32_0, %c0_i32_1 : i32, i32, i32
  }
  func.func @transform_2(%arg0: i32, %arg1: i32) -> (i32, i32) {
    %c0_i32 = arith.constant 0 : i32
    %c0_i32_0 = arith.constant 0 : i32
    %c0_i32_1 = arith.constant 0 : i32
    return %c0_i32, %c0_i32_0 : i32, i32
  }
  func.func @transform_3(%arg0: i32, %arg1: i32) -> (i32, i32, i32, i32) {
    %c0_i32 = arith.constant 0 : i32
    %c0_i32_0 = arith.constant 0 : i32
    %c0_i32_1 = arith.constant 0 : i32
    return %arg0, %arg1, %c0_i32, %c0_i32_0 : i32, i32, i32, i32
  }
}

</mosaic_0001>

<bundles_post_ra>
// kernel: tpu_custom_call.1
= control target key start
LH: loop header
LB: loop body
LE: loop exit
PB: predicated region body
PF: predicated region fallthrough
CT: control target
= control target key end

     0   :  { %8 = vsyncpa [#allocation3], 0  ;;  %s4691_s0 = inlined_call_operand.vmem [shape: f32[2,18,18,8], index: 0, kind: input, shape index: {}]   ;;  %s4692_s1 = inlined_call_operand.vmem [shape: f32[9,8,128], index: 1, kind: input, shape index: {}]   ;;  %s4693_s2 = inlined_call_operand.vmem [shape: f32[1,128], index: 2, kind: input, shape index: {}]   ;;  %s4694_s3 = inlined_call_operand.hbm [shape: f32[2,16,16,128], index: 3, kind: output, shape index: {}]  }
   0x1   :  { %10 = vsyncpa [#allocation3 + $0x1], 0  ;;  %s3471_s12 = smov 0   ;;  %s3473_s13 = smov 0  }
   0x2   :  { %s3475_s14 = smov 0   ;;  %s3477_s15 = smov 0  }
   0x3   :  { %s3479_s16 = smov 0   ;;  %s3481_s17 = smov 0  }
   0x4 LB: > { %s2806_s18 = sadd.s32 4294967295, %s3447_s17   ;;  %s2807_s19 = sadd.s32 4294967294, %s3447_s17   ;;  %s3447_s17 = sphi %s3481_s17, %s16_s17   ;;  %s3443_s16 = sphi %s3479_s16, %s4812_s16   ;;  %s3439_s15 = sphi %s3477_s15, %s4811_s15   ;;  %s3435_s14 = sphi %s3475_s14, %s4810_s14   ;;  %s3431_s13 = sphi %s3473_s13, %s4809_s13   ;;  %s3427_s12 = sphi %s3471_s12, %s4808_s12  }
   0x5   : > { %s28_s20 = sadd.s32 1, %s3443_s16  ;;  %s105_s21 = sadd.s32 1, %s3435_s14 }
   0x6   : > { %p30_p0 = scmp.ge.s32.totalorder %s28_s20, 2  ;;  %p115_p1 = scmp.ne.s32.totalorder %s3435_s14, %s3431_s13 }
   0x7   : > { %p116_p2 = scmp.eq.s32.totalorder %s2806_s18, 1  ;;  %p121_p3 = scmp.ne.s32.totalorder %s3431_s13, %s3427_s12 }
   0x8   : > { %s4814_s20 = smov (%p30_p0, %s28_s20), 0  ;;  %p122_p5 = scmp.eq.s32.totalorder %s2807_s19, 1 }
   0x9   : > { %p3511_p4 = por %p116_p2, %p115_p1  ;;  %s100_s23 = ssub.s32 %s3443_s16, %s4814_s20 }
   0xa   : > { %p2810_p6 = scmp.ge.s32.totalorder %s3447_s17, 1  ;;  %p103_p7 = scmp.eq.s32.totalorder %s100_s23, 0 }
   0xb   : > { %p3518_p8 = por %p122_p5, %p121_p3  ;;  %p154_p9 = scmp.lt.s32.totalorder %s3447_s17, 3 }
   0xc   : > { %s3524_s25 = scalar_select %p103_p7, %s3435_s14, %s105_s21  }
   0xd   : > { %p155_p10 = pnand %p2810_p6, %p154_p9 }
   0xf   : > { %158 = sbr.rel (%p155_p10) target bundleno = 743 (0x2e7), region = 32 }
  0x14   : > { %v2813_v0 = vld [vmem:[%s4692_s1 + $0x8] sm:$0xff]  ;;  %p178_p11 = scmp.lt.s32.totalorder %s3439_s15, 1  ;;  %v2878_v1 = vld [vmem:[%s4692_s1 + $0x10] sm:$0xff]  ;;  %v2943_v2 = vld [vmem:[%s4692_s1 + $0x18] sm:$0xff]  ;;  %vm254_vm0 = vcmask 64512   ;;  %s175_s5 = sand.u32 1, %s3431_s13  }
  0x15   : > { %3307 = vmatpush.msra.mxu1 %v2813_v0  ;;  %3308 = vmatpush.msra.mxu2 %v2813_v0  ;;  %v219_v3 = vld [vmem:[%s4692_s1] sm:$0xff]  ;;  %v3138_v25 = vld [vmem:[%s4692_s1 + $0x30] sm:$0xff]  ;;  %v3203_v26 = vld [vmem:[%s4692_s1 + $0x38] sm:$0xff]  ;;  %s2811_s6 = sshll.u32 %s175_s5, 8  ;;  %s3389_s30 = scalar_lea.hbm %s4694_s3, 512 }
  0x16   : > { %s179_s7 = scalar_select %p178_p11, %s3439_s15, 1  ;;  %3309 = vmatpush.msra.mxu3 %v2813_v0  ;;  %v3008_v4 = vld [vmem:[%s4692_s1 + $0x20] sm:$0xff]  ;;  %366 = vmatpush.msra.mxu0 %v2813_v0  ;;  %v3073_v27 = vld [vmem:[%s4692_s1 + $0x28] sm:$0xff] }
  0x17   : > { %818 = vmatpush.msrb.mxu2 %v2878_v1  ;;  %575 = vmatpush.msrb.mxu1 %v219_v3  ;;  %v3268_v32 = vld [vmem:[%s4692_s1 + $0x40] sm:$0xff]  ;;  %s4447_s9 = scalar_lea.vmem [#allocation2], %s2811_s6 }
  0x18   : > { %1096 = vmatpush.msrb.mxu3 %v2943_v2  ;;  %s3310_s10 = smul.u32 432, %s179_s7  ;;  %1371 = vmatpush.msrb.mxu0 %v3008_v4  ;;  %s2720_s21 = sshll.u32 %s4447_s9, 4  ;;  %s2721_s21 = int_to_ptr.vmem [resolvable:$true] %s2720_s21 }
  0x1a   : > { %s3546_s19 = scalar_lea.vmem %s4691_s0, %s3310_s10  ;;  %s3306_s10 = sshll.u32 %s3439_s15, 8 }
  0x1b   : > { %v3549_v5 = vld [vmem:[%s3546_s19 + $0x61] sm:$0xff]  ;;  %v3566_v9 = vld [vmem:[%s3546_s19 + $0x69] sm:$0xff]  ;;  %v3583_v13 = vld [vmem:[%s3546_s19 + $0x79] sm:$0xff]  ;;  %s2705_s15 = scalar_lea.sflag [#allocation3], %s175_s5 }
  0x1c   : > { %v3552_v6 = vld [vmem:[%s3546_s19 + $0xc1] sm:$0xff]  ;;  %2822 = vmatmul.msk.f32.vlgmr.msra.gmra.mxu1 %vm254_vm0, %v3549_v5  ;;  %v3569_v10 = vld [vmem:[%s3546_s19 + $0xc9] sm:$0xff]  ;;  %v3586_v14 = vld [vmem:[%s3546_s19 + $0xd9] sm:$0xff] }
  0x1d   : > { %v3555_v7 = vld [vmem:[%s3546_s19 + $0x121] sm:$0xff]  ;;  %2830 = vmatmul.msk.f32.vlgmr.msra.gmra.mxu2 %vm254_vm0, %v3552_v6  ;;  %v3572_v11 = vld [vmem:[%s3546_s19 + $0x129] sm:$0xff]  ;;  %v3589_v15 = vld [vmem:[%s3546_s19 + $0x139] sm:$0xff]  ;;  %1646 = vmatpush.msra.mxu1 %v3073_v27 }
  0x1e   : > { %v220_v8 = vld [vmem:[%s3546_s19 + $0x1] sm:$0xff]  ;;  %2838 = vmatmul.msk.f32.vlgmr.msra.gmra.mxu3 %vm254_vm0, %v3555_v7  ;;  %v221_v12 = vld [vmem:[%s3546_s19 + $0x9] sm:$0xff]  ;;  %v222_v16 = vld [vmem:[%s3546_s19 + $0x19] sm:$0xff]  ;;  %1924 = vmatpush.msra.mxu2 %v3138_v25 }
  0x1f   : > { %2814 = vmatmul.msk.f32.vlgmr.msra.gmra.mxu0 %vm254_vm0, %v220_v8  ;;  %v3600_v17 = vld [vmem:[%s3546_s19 + $0x81] sm:$0xff]  ;;  %v3617_v21 = vld [vmem:[%s3546_s19 + $0x91] sm:$0xff]  ;;  %2199 = vmatpush.msra.mxu3 %v3203_v26  ;;  %v3646_v28 = vld [vmem:[%s3546_s19 + $0x99] sm:$0xff] }
  0x20   : > { %v3603_v18 = vld [vmem:[%s3546_s19 + $0xe1] sm:$0xff]  ;;  %v3620_v22 = vld [vmem:[%s3546_s19 + $0xf1] sm:$0xff]  ;;  %v3649_v29 = vld [vmem:[%s3546_s19 + $0xf9] sm:$0xff]  ;;  %2474 = vmatpush.msra.mxu0 %v3268_v32 }
  0x21   : > { %v3606_v19 = vld [vmem:[%s3546_s19 + $0x141] sm:$0xff]  ;;  %v3623_v23 = vld [vmem:[%s3546_s19 + $0x151] sm:$0xff]  ;;  %v3652_v30 = vld [vmem:[%s3546_s19 + $0x159] sm:$0xff] }
  0x22   : > { %v223_v20 = vld [vmem:[%s3546_s19 + $0x21] sm:$0xff]  ;;  %v3626_v24 = vld [vmem:[%s3546_s19 + $0x31] sm:$0xff]  ;;  %v3655_v31 = vld [vmem:[%s3546_s19 + $0x39] sm:$0xff] }
  0x23   : > { %v3669_v33 = vld [vmem:[%s3546_s19 + $0xa9] sm:$0xff]  ;;  %v3689_v37 = vld [vmem:[%s3546_s19 + $0xb1] sm:$0xff]  ;;  %v187_v41 = vld [vmem:[%s3546_s19] sm:$0xff] }
  0x24   : > { %2823 = vmatmul.msk.f32.gmra.mxu1 %vm254_vm0, %v3566_v9  ;;  %v3672_v34 = vld [vmem:[%s3546_s19 + $0x109] sm:$0xff]  ;;  %v3692_v38 = vld [vmem:[%s3546_s19 + $0x111] sm:$0xff]  ;;  %v2912_v46 = vld [vmem:[%s3546_s19 + $0x20] sm:$0xff] }
  0x25   : > { %2831 = vmatmul.msk.f32.gmra.mxu2 %vm254_vm0, %v3569_v10  ;;  %v3675_v35 = vld [vmem:[%s3546_s19 + $0x169] sm:$0xff]  ;;  %v3695_v39 = vld [vmem:[%s3546_s19 + $0x171] sm:$0xff]  ;;  %v3723_v47 = vld [vmem:[%s3546_s19 + $0x1a] sm:$0xff] }
  0x26   : > { %2839 = vmatmul.msk.f32.gmra.mxu3 %vm254_vm0, %v3572_v11  ;;  %v3678_v36 = vld [vmem:[%s3546_s19 + $0x49] sm:$0xff]  ;;  %v3698_v40 = vld [vmem:[%s3546_s19 + $0x51] sm:$0xff]  ;;  %v3763_v53 = vld [vmem:[%s3546_s19 + $0x3a] sm:$0xff] }
  0x27   : > { %2815 = vmatmul.msk.f32.gmra.mxu0 %vm254_vm0, %v221_v12  ;;  %v673_v42 = vld [vmem:[%s3546_s19 + $0x2] sm:$0xff]  ;;  %v2911_v43 = vld [vmem:[%s3546_s19 + $0x18] sm:$0xff]  ;;  %v674_v45 = vld [vmem:[%s3546_s19 + $0xa] sm:$0xff] }
  0x28   : > { %v188_v44 = vld [vmem:[%s3546_s19 + $0x8] sm:$0xff]  ;;  %v3726_v48 = vld [vmem:[%s3546_s19 + $0x30] sm:$0xff]  ;;  %v3739_v50 = vld [vmem:[%s3546_s19 + $0x38] sm:$0xff] }
  0x29   : > { %v3736_v49 = vld [vmem:[%s3546_s19 + $0x22] sm:$0xff]  ;;  %v3749_v51 = vld [vmem:[%s3546_s19 + $0x32] sm:$0xff]  ;;  %v3777_v55 = vld [vmem:[%s3546_s19 + $0x4a] sm:$0xff] }
  0x2a   : > { %v3752_v52 = vld [vmem:[%s3546_s19 + $0x48] sm:$0xff]  ;;  %v3766_v54 = vld [vmem:[%s3546_s19 + $0x50] sm:$0xff]  ;;  %v3780_v56 = vld [vmem:[%s3546_s19 + $0x60] sm:$0xff] }
  0x2b   : > { %v3791_v57 = vld [vmem:[%s3546_s19 + $0x52] sm:$0xff]  ;;  %v3794_v58 = vld [vmem:[%s3546_s19 + $0x68] sm:$0xff]  ;;  %v3832_v3 = vld [vmem:[%s3546_s19 + $0x80] sm:$0xff] }
  0x2c   : > { %2824 = vmatmul.msk.f32.gmra.mxu1 %vm254_vm0, %v3583_v13  ;;  %4722 = vst [vmem:[#allocation5_spill] sm:$0xff] %v3794_v58  ;;  %v3807_v60 = vld [vmem:[%s3546_s19 + $0x62] sm:$0xff]  ;;  %v3810_v61 = vld [vmem:[%s3546_s19 + $0x78] sm:$0xff]  ;;  %v3829_v2 = vld [vmem:[%s3546_s19 + $0x6a] sm:$0xff] }
  0x2d   : > { %2832 = vmatmul.msk.f32.gmra.mxu2 %vm254_vm0, %v3586_v14  ;;  %4723 = vst [vmem:[#allocation6_spill] sm:$0xff] %v3810_v61  ;;  %v3851_v12 = vld [vmem:[%s3546_s19 + $0x7a] sm:$0xff]  ;;  %v3873_v26 = vld [vmem:[%s3546_s19 + $0x82] sm:$0xff] }
  0x2e   : > { %2840 = vmatmul.msk.f32.gmra.mxu3 %vm254_vm0, %v3589_v15  ;;  %4725 = vst [vmem:[#allocation8_spill] sm:$0xff] %v3829_v2  ;;  %v3876_v27 = vld [vmem:[%s3546_s19 + $0x98] sm:$0xff] }
  0x2f   : > { %2816 = vmatmul.msk.f32.gmra.mxu0 %vm254_vm0, %v222_v16  ;;  %4726 = vst [vmem:[#allocation9_spill] sm:$0xff] %v3832_v3 }
  0x30   : > { %4728 = vst [vmem:[#allocation11_spill] sm:$0xff] %v3851_v12 }
  0x31   : > { %4731 = vst [vmem:[#allocation14_spill] sm:$0xff] %v3873_v26 }
  0x32   : > { %4732 = vst [vmem:[#allocation15_spill] sm:$0xff] %v3876_v27 }
  0x34   : > { %2825 = vmatmul.msk.f32.gmra.mxu1 %vm254_vm0, %v3600_v17 }
  0x35   : > { %2833 = vmatmul.msk.f32.gmra.mxu2 %vm254_vm0, %v3603_v18 }
  0x36   : > { %2841 = vmatmul.msk.f32.gmra.mxu3 %vm254_vm0, %v3606_v19 }
  0x37   : > { %2817 = vmatmul.msk.f32.gmra.mxu0 %vm254_vm0, %v223_v20 }
  0x3c   : > { %2826 = vmatmul.msk.f32.gmra.mxu1 %vm254_vm0, %v3617_v21 }
  0x3d   : > { %2834 = vmatmul.msk.f32.gmra.mxu2 %vm254_vm0, %v3620_v22 }
  0x3e   : > { %2842 = vmatmul.msk.f32.gmra.mxu3 %vm254_vm0, %v3623_v23 }
  0x3f   : > { %2818 = vmatmul.msk.f32.gmra.mxu0 %vm254_vm0, %v3626_v24 }
  0x44   : > { %2827 = vmatmul.msk.f32.gmra.mxu1 %vm254_vm0, %v3646_v28 }
  0x45   : > { %2835 = vmatmul.msk.f32.gmra.mxu2 %vm254_vm0, %v3649_v29 }
  0x46   : > { %2843 = vmatmul.msk.f32.gmra.mxu3 %vm254_vm0, %v3652_v30 }
  0x47   : > { %2819 = vmatmul.msk.f32.gmra.mxu0 %vm254_vm0, %v3655_v31 }
  0x4c   : > { %2828 = vmatmul.msk.f32.gmra.mxu1 %vm254_vm0, %v3669_v33 }
  0x4d   : > { %2836 = vmatmul.msk.f32.gmra.mxu2 %vm254_vm0, %v3672_v34 }
  0x4e   : > { %2844 = vmatmul.msk.f32.gmra.mxu3 %vm254_vm0, %v3675_v35 }
  0x4f   : > { %2820 = vmatmul.msk.f32.gmra.mxu0 %vm254_vm0, %v3678_v36 }
  0x54   : > { %2829 = vmatmul.msk.f32.gmra.mxu1 %vm254_vm0, %v3689_v37 }
  0x55   : > { %2837 = vmatmul.msk.f32.gmra.mxu2 %vm254_vm0, %v3692_v38 }
  0x56   : > { %2845 = vmatmul.msk.f32.gmra.mxu3 %vm254_vm0, %v3695_v39 }
  0x57   : > { %2821 = vmatmul.msk.f32.gmra.mxu0 %vm254_vm0, %v3698_v40 }
  0x5c   : > { %2846 = vmatmul.msk.f32.vlgmr.msrb.gmra.mxu1 %vm254_vm0, %v187_v41 }
  0x5d   : > { %2879 = vmatmul.msk.f32.vlgmr.msrb.gmra.mxu2 %vm254_vm0, %v673_v42 }
  0x5e   : > { %2944 = vmatmul.msk.f32.vlgmr.msrb.gmra.mxu3 %vm254_vm0, %v2911_v43 }
  0x5f   : > { %3009 = vmatmul.msk.f32.vlgmr.msrb.gmra.mxu0 %vm254_vm0, %v222_v16 }
  0x64   : > { %2847 = vmatmul.msk.f32.gmra.mxu1 %vm254_vm0, %v188_v44  ;;  %v3898_v44 = vld [vmem:[%s3546_s19 + $0xa8] sm:$0xff] }
  0x65   : > { %2880 = vmatmul.msk.f32.gmra.mxu2 %vm254_vm0, %v674_v45  ;;  %4735 = vst [vmem:[#allocation18_spill] sm:$0xff] %v3898_v44 }
  0x66   : > { %2945 = vmatmul.msk.f32.gmra.mxu3 %vm254_vm0, %v2912_v46 }
  0x67   : > { %3010 = vmatmul.msk.f32.gmra.mxu0 %vm254_vm0, %v223_v20 }
  0x6c   : > { %2848 = vmatmul.msk.f32.gmra.mxu1 %vm254_vm0, %v2911_v43  ;;  %v3895_v43 = vld [vmem:[%s3546_s19 + $0x92] sm:$0xff] }
  0x6d   : > { %2881 = vmatmul.msk.f32.gmra.mxu2 %vm254_vm0, %v3723_v47  ;;  %4734 = vst [vmem:[#allocation17_spill] sm:$0xff] %v3895_v43 }
  0x6e   : > { %2946 = vmatmul.msk.f32.gmra.mxu3 %vm254_vm0, %v3726_v48 }
  0x6f   : > { %3011 = vmatmul.msk.f32.gmra.mxu0 %vm254_vm0, %v3626_v24 }
  0x74   : > { %2849 = vmatmul.msk.f32.gmra.mxu1 %vm254_vm0, %v2912_v46 }
  0x75   : > { %2882 = vmatmul.msk.f32.gmra.mxu2 %vm254_vm0, %v3736_v49 }
  0x76   : > { %2947 = vmatmul.msk.f32.gmra.mxu3 %vm254_vm0, %v3739_v50 }
  0x77   : > { %3012 = vmatmul.msk.f32.gmra.mxu0 %vm254_vm0, %v3655_v31 }
  0x7c   : > { %2850 = vmatmul.msk.f32.gmra.mxu1 %vm254_vm0, %v3726_v48 }
  0x7d   : > { %2883 = vmatmul.msk.f32.gmra.mxu2 %vm254_vm0, %v3749_v51 }
  0x7e   : > { %2948 = vmatmul.msk.f32.gmra.mxu3 %vm254_vm0, %v3752_v52 }
  0x7f   : > { %3013 = vmatmul.msk.f32.gmra.mxu0 %vm254_vm0, %v3678_v36 }
  0x84   : > { %2851 = vmatmul.msk.f32.gmra.mxu1 %vm254_vm0, %v3739_v50 }
  0x85   : > { %2884 = vmatmul.msk.f32.gmra.mxu2 %vm254_vm0, %v3763_v53 }
  0x86   : > { %2949 = vmatmul.msk.f32.gmra.mxu3 %vm254_vm0, %v3766_v54 }
  0x87   : > { %3014 = vmatmul.msk.f32.gmra.mxu0 %vm254_vm0, %v3698_v40 }
  0x8c   : > { %2852 = vmatmul.msk.f32.gmra.mxu1 %vm254_vm0, %v3752_v52 }
  0x8d   : > { %2885 = vmatmul.msk.f32.gmra.mxu2 %vm254_vm0, %v3777_v55 }
  0x8e   : > { %2950 = vmatmul.msk.f32.gmra.mxu3 %vm254_vm0, %v3780_v56 }
  0x8f   : > { %3015 = vmatmul.msk.f32.gmra.mxu0 %vm254_vm0, %v3549_v5 }
  0x94   : > { %2853 = vmatmul.msk.f32.gmra.mxu1 %vm254_vm0, %v3766_v54 }
  0x95   : > { %2886 = vmatmul.msk.f32.gmra.mxu2 %vm254_vm0, %v3791_v57 }
  0x96   : > { %2951 = vmatmul.msk.f32.gmra.mxu3 %vm254_vm0, %v3794_v58 }
  0x97   : > { %3016 = vmatmul.msk.f32.gmra.mxu0 %vm254_vm0, %v3566_v9 }
  0x99   : > { %v3804_v59 = vpop.f32.mrf.mxu1 }
  0x9c   : > { %v3812_v62 = vpop.f32.mrf.mxu0  ;;  %2854 = vmatmul.msk.f32.gmra.mxu1 %vm254_vm0, %v3780_v56 }
  0x9d   : > { %2887 = vmatmul.msk.f32.gmra.mxu2 %vm254_vm0, %v3807_v60 }
  0x9e   : > { %2952 = vmatmul.msk.f32.gmra.mxu3 %vm254_vm0, %v3810_v61 }
  0x9f   : > { %3017 = vmatmul.msk.f32.gmra.mxu0 %vm254_vm0, %v3583_v13  ;;  %v3854_v13 = vld [vmem:[%s3546_s19 + $0x90] sm:$0xff] }
  0xa0   : > { %v3822_v63 = vpop.f32.mrf.mxu2  ;;  %4729 = vst [vmem:[#allocation12_spill] sm:$0xff] %v3854_v13 }
  0xa1   : > { %v3824_v0 = vpop.f32.mrf.mxu3  ;;  %v3826_v1 = vpop.f32.mrf.mxu1 }
  0xa2   : > { %4724 = vst [vmem:[#allocation7_spill] sm:$0xff] %v3824_v0 }
  0xa4   : > { %v3834_v4 = vpop.f32.mrf.mxu0  ;;  %2855 = vmatmul.msk.f32.gmra.mxu1 %vm254_vm0, %v3794_v58  ;;  %v3999_v58 = vld [vmem:[%s3546_s19 + $0xe0] sm:$0xff] }
  0xa5   : > { %2888 = vmatmul.msk.f32.gmra.mxu2 %vm254_vm0, %v3829_v2  ;;  %v3996_v2 = vld [vmem:[%s3546_s19 + $0xca] sm:$0xff] }
  0xa6   : > { %2953 = vmatmul.msk.f32.gmra.mxu3 %vm254_vm0, %v3832_v3 }
  0xa7   : > { %3018 = vmatmul.msk.f32.gmra.mxu0 %vm254_vm0, %v3600_v17 }
  0xa8   : > { %v3844_v5 = vpop.f32.mrf.mxu2 }
  0xa9   : > { %v3846_v8 = vpop.f32.mrf.mxu3  ;;  %v3848_v9 = vpop.f32.mrf.mxu1 }
  0xaa   : > { %4727 = vst [vmem:[#allocation10_spill] sm:$0xff] %v3846_v8  ;;  %v3920_v8 = vld [vmem:[%s3546_s19 + $0xb0] sm:$0xff] }
  0xab   : > { %4739 = vst [vmem:[#allocation22_spill] sm:$0xff] %v3920_v8 }
  0xac   : > { %v3856_v16 = vpop.f32.mrf.mxu0  ;;  %2856 = vmatmul.msk.f32.gmra.mxu1 %vm254_vm0, %v3810_v61  ;;  %v3984_v61 = vld [vmem:[%s3546_s19 + $0xd8] sm:$0xff] }
  0xad   : > { %2889 = vmatmul.msk.f32.gmra.mxu2 %vm254_vm0, %v3851_v12 }
  0xae   : > { %2954 = vmatmul.msk.f32.gmra.mxu3 %vm254_vm0, %v3854_v13 }
  0xaf   : > { %3019 = vmatmul.msk.f32.gmra.mxu0 %vm254_vm0, %v3617_v21 }
  0xb0   : > { %v3866_v17 = vpop.f32.mrf.mxu2 }
  0xb1   : > { %v3868_v20 = vpop.f32.mrf.mxu3  ;;  %v3870_v25 = vpop.f32.mrf.mxu1 }
  0xb2   : > { %4730 = vst [vmem:[#allocation13_spill] sm:$0xff] %v3868_v20  ;;  %v3917_v20 = vld [vmem:[%s3546_s19 + $0x9a] sm:$0xff] }
  0xb3   : > { %4738 = vst [vmem:[#allocation21_spill] sm:$0xff] %v3917_v20 }
  0xb4   : > { %v3878_v32 = vpop.f32.mrf.mxu0  ;;  %2857 = vmatmul.msk.f32.gmra.mxu1 %vm254_vm0, %v3832_v3  ;;  %v3961_v3 = vld [vmem:[%s3546_s19 + $0xb2] sm:$0xff] }
  0xb5   : > { %2890 = vmatmul.msk.f32.gmra.mxu2 %vm254_vm0, %v3873_v26  ;;  %4746 = vst [vmem:[#allocation29_spill] sm:$0xff] %v3961_v3 }
  0xb6   : > { %2955 = vmatmul.msk.f32.gmra.mxu3 %vm254_vm0, %v3876_v27 }
  0xb7   : > { %3020 = vmatmul.msk.f32.gmra.mxu0 %vm254_vm0, %v3646_v28 }
  0xb8   : > { %v3888_v21 = vpop.f32.mrf.mxu2 }
  0xb9   : > { %v3890_v41 = vpop.f32.mrf.mxu3  ;;  %v3892_v42 = vpop.f32.mrf.mxu1 }
  0xba   : > { %4733 = vst [vmem:[#allocation16_spill] sm:$0xff] %v3890_v41 }
  0xbc   : > { %v3900_v45 = vpop.f32.mrf.mxu0  ;;  %2858 = vmatmul.msk.f32.gmra.mxu1 %vm254_vm0, %v3854_v13  ;;  %v3939_v13 = vld [vmem:[%s3546_s19 + $0xaa] sm:$0xff] }
  0xbd   : > { %2891 = vmatmul.msk.f32.gmra.mxu2 %vm254_vm0, %v3895_v43  ;;  %4742 = vst [vmem:[#allocation25_spill] sm:$0xff] %v3939_v13 }
  0xbe   : > { %2956 = vmatmul.msk.f32.gmra.mxu3 %vm254_vm0, %v3898_v44 }
  0xbf   : > { %3021 = vmatmul.msk.f32.gmra.mxu0 %vm254_vm0, %v3669_v33 }
  0xc0   : > { %v3910_v28 = vpop.f32.mrf.mxu2 }
  0xc1   : > { %4736 = vst [vmem:[#allocation19_spill] sm:$0xff] %v3910_v28  ;;  %v3912_v46 = vpop.f32.mrf.mxu3  ;;  %v3914_v41 = vpop.f32.mrf.mxu1 }
  0xc2   : > { %4737 = vst [vmem:[#allocation20_spill] sm:$0xff] %v3912_v46 }
  0xc4   : > { %v3922_v0 = vpop.f32.mrf.mxu0  ;;  %2859 = vmatmul.msk.f32.gmra.mxu1 %vm254_vm0, %v3876_v27  ;;  %v3942_v27 = vld [vmem:[%s3546_s19 + $0xc0] sm:$0xff] }
  0xc5   : > { %2892 = vmatmul.msk.f32.gmra.mxu2 %vm254_vm0, %v3917_v20  ;;  %4743 = vst [vmem:[#allocation26_spill] sm:$0xff] %v3942_v27 }
  0xc6   : > { %2957 = vmatmul.msk.f32.gmra.mxu3 %vm254_vm0, %v3920_v8 }
  0xc7   : > { %3022 = vmatmul.msk.f32.gmra.mxu0 %vm254_vm0, %v3689_v37 }
  0xc8   : > { %v3932_v33 = vpop.f32.mrf.mxu2 }
  0xc9   : > { %4740 = vst [vmem:[#allocation23_spill] sm:$0xff] %v3932_v33  ;;  %v3934_v46 = vpop.f32.mrf.mxu3  ;;  %v3936_v43 = vpop.f32.mrf.mxu1 }
  0xca   : > { %4741 = vst [vmem:[#allocation24_spill] sm:$0xff] %v3934_v46 }
  0xcc   : > { %v3944_v26 = vpop.f32.mrf.mxu0  ;;  %2860 = vmatmul.msk.f32.gmra.mxu1 %vm254_vm0, %v3898_v44  ;;  %v3964_v44 = vld [vmem:[%s3546_s19 + $0xc8] sm:$0xff] }
  0xcd   : > { %2893 = vmatmul.msk.f32.gmra.mxu2 %vm254_vm0, %v3939_v13 }
  0xce   : > { %2958 = vmatmul.msk.f32.gmra.mxu3 %vm254_vm0, %v3942_v27 }
  0xcf   : > { %3023 = vmatmul.msk.f32.gmra.mxu0 %vm254_vm0, %v3552_v6 }
  0xd0   : > { %v3954_v37 = vpop.f32.mrf.mxu2 }
  0xd1   : > { %4744 = vst [vmem:[#allocation27_spill] sm:$0xff] %v3954_v37  ;;  %v3956_v46 = vpop.f32.mrf.mxu3  ;;  %v3958_v20 = vpop.f32.mrf.mxu1  ;;  %v3981_v37 = vld [vmem:[%s3546_s19 + $0xc2] sm:$0xff] }
  0xd2   : > { %4745 = vst [vmem:[#allocation28_spill] sm:$0xff] %v3956_v46 }
  0xd3   : > { %4749 = vst [vmem:[#allocation32_spill] sm:$0xff] %v3981_v37 }
  0xd4   : > { %v3966_v12 = vpop.f32.mrf.mxu0  ;;  %2861 = vmatmul.msk.f32.gmra.mxu1 %vm254_vm0, %v3920_v8 }
  0xd5   : > { %2894 = vmatmul.msk.f32.gmra.mxu2 %vm254_vm0, %v3961_v3 }
  0xd6   : > { %2959 = vmatmul.msk.f32.gmra.mxu3 %vm254_vm0, %v3964_v44 }
  0xd7   : > { %3024 = vmatmul.msk.f32.gmra.mxu0 %vm254_vm0, %v3569_v10 }
  0xd8   : > { %v3976_v6 = vpop.f32.mrf.mxu2 }
  0xd9   : > { %4747 = vst [vmem:[#allocation30_spill] sm:$0xff] %v3976_v6  ;;  %v3978_v46 = vpop.f32.mrf.mxu3  ;;  %v577_v13 = vpop.f32.mrf.mxu1 }
  0xda   : > { %4748 = vst [vmem:[#allocation31_spill] sm:$0xff] %v3978_v46  ;;  %v578_v10 = vadd.f32 %v577_v13, %v3812_v62 }
  0xdc   : > { %v1373_v8 = vpop.f32.mrf.mxu0  ;;  %2862 = vmatmul.msk.f32.gmra.mxu1 %vm254_vm0, %v3942_v27 }
  0xdd   : > { %2895 = vmatmul.msk.f32.gmra.mxu2 %vm254_vm0, %v3981_v37 }
  0xde   : > { %2960 = vmatmul.msk.f32.gmra.mxu3 %vm254_vm0, %v3984_v61 }
  0xdf   : > { %3025 = vmatmul.msk.f32.gmra.mxu0 %vm254_vm0, %v3586_v14 }
  0xe0   : > { %v820_v46 = vpop.f32.mrf.mxu2 }
  0xe1   : > { %v916_v3 = vadd.f32 %v820_v46, %v578_v10  ;;  %v1098_v6 = vpop.f32.mrf.mxu3  ;;  %v580_v33 = vpop.f32.mrf.mxu1 }
  0xe2   : > { %v581_v14 = vadd.f32 %v580_v33, %v3834_v4 }
  0xe3   : > { %v1194_v27 = vadd.f32 %v1098_v6, %v916_v3  ;;  %v4016_v6 = vld [vmem:[%s3546_s19 + $0xf0] sm:$0xff] }
  0xe4   : > { %v1376_v37 = vpop.f32.mrf.mxu0  ;;  %2863 = vmatmul.msk.f32.gmra.mxu1 %vm254_vm0, %v3964_v44 }
  0xe5   : > { %v4001_v28 = vadd.f32 %v1373_v8, %v1194_v27  ;;  %2896 = vmatmul.msk.f32.gmra.mxu2 %vm254_vm0, %v3996_v2  ;;  %v4013_v27 = vld [vmem:[%s3546_s19 + $0xda] sm:$0xff] }
  0xe6   : > { %2961 = vmatmul.msk.f32.gmra.mxu3 %vm254_vm0, %v3999_v58 }
  0xe7   : > { %4750 = vst [vmem:[#allocation33_spill] sm:$0xff] %v4001_v28  ;;  %3026 = vmatmul.msk.f32.gmra.mxu0 %vm254_vm0, %v3603_v18 }
  0xe8   : > { %v823_v62 = vpop.f32.mrf.mxu2 }
  0xe9   : > { %v917_v3 = vadd.f32 %v823_v62, %v581_v14  ;;  %v1101_v13 = vpop.f32.mrf.mxu3  ;;  %v583_v8 = vpop.f32.mrf.mxu1  ;;  %v4030_v62 = vld [vmem:[%s3546_s19 + $0xe2] sm:$0xff] }
  0xea   : > { %v584_v18 = vadd.f32 %v583_v8, %v3856_v16 }
  0xeb   : > { %v1195_v46 = vadd.f32 %v1101_v13, %v917_v3  ;;  %v4033_v13 = vld [vmem:[%s3546_s19 + $0xf8] sm:$0xff] }
  0xec   : > { %v1379_v10 = vpop.f32.mrf.mxu0  ;;  %2864 = vmatmul.msk.f32.gmra.mxu1 %vm254_vm0, %v3984_v61 }
  0xed   : > { %v4018_v28 = vadd.f32 %v1376_v37, %v1195_v46  ;;  %2897 = vmatmul.msk.f32.gmra.mxu2 %vm254_vm0, %v4013_v27 }
  0xee   : > { %2962 = vmatmul.msk.f32.gmra.mxu3 %vm254_vm0, %v4016_v6 }
  0xef   : > { %4751 = vst [vmem:[#allocation34_spill] sm:$0xff] %v4018_v28  ;;  %3027 = vmatmul.msk.f32.gmra.mxu0 %vm254_vm0, %v3620_v22 }
  0xf0   : > { %v826_v4 = vpop.f32.mrf.mxu2 }
  0xf1   : > { %v918_v33 = vadd.f32 %v826_v4, %v584_v18  ;;  %v1104_v14 = vpop.f32.mrf.mxu3  ;;  %v586_v37 = vpop.f32.mrf.mxu1  ;;  %v4047_v4 = vld [vmem:[%s3546_s19 + $0xf2] sm:$0xff] }
  0xf2   : > { %v587_v22 = vadd.f32 %v586_v37, %v3878_v32 }
  0xf3   : > { %v1196_v3 = vadd.f32 %v1104_v14, %v918_v33  ;;  %v4050_v14 = vld [vmem:[%s3546_s19 + $0x108] sm:$0xff] }
  0xf4   : > { %v1382_v46 = vpop.f32.mrf.mxu0  ;;  %2865 = vmatmul.msk.f32.gmra.mxu1 %vm254_vm0, %v3999_v58 }
  0xf5   : > { %v4035_v28 = vadd.f32 %v1379_v10, %v1196_v3  ;;  %2898 = vmatmul.msk.f32.gmra.mxu2 %vm254_vm0, %v4030_v62 }
  0xf6   : > { %2963 = vmatmul.msk.f32.gmra.mxu3 %vm254_vm0, %v4033_v13 }
  0xf7   : > { %4752 = vst [vmem:[#allocation35_spill] sm:$0xff] %v4035_v28  ;;  %3028 = vmatmul.msk.f32.gmra.mxu0 %vm254_vm0, %v3649_v29 }
  0xf8   : > { %v829_v16 = vpop.f32.mrf.mxu2 }
  0xf9   : > { %v919_v8 = vadd.f32 %v829_v16, %v587_v22  ;;  %v1107_v18 = vpop.f32.mrf.mxu3  ;;  %v589_v10 = vpop.f32.mrf.mxu1  ;;  %v4064_v16 = vld [vmem:[%s3546_s19 + $0xfa] sm:$0xff] }
  0xfa   : > { %v590_v29 = vadd.f32 %v589_v10, %v3900_v45 }
  0xfb   : > { %v1197_v33 = vadd.f32 %v1107_v18, %v919_v8  ;;  %v4067_v18 = vld [vmem:[%s3546_s19 + $0x110] sm:$0xff] }
  0xfc   : > { %v1385_v3 = vpop.f32.mrf.mxu0  ;;  %2866 = vmatmul.msk.f32.gmra.mxu1 %vm254_vm0, %v4016_v6 }
  0xfd   : > { %v4052_v28 = vadd.f32 %v1382_v46, %v1197_v33  ;;  %2899 = vmatmul.msk.f32.gmra.mxu2 %vm254_vm0, %v4047_v4 }
  0xfe   : > { %2964 = vmatmul.msk.f32.gmra.mxu3 %vm254_vm0, %v4050_v14 }
  0xff   : > { %4753 = vst [vmem:[#allocation36_spill] sm:$0xff] %v4052_v28  ;;  %3029 = vmatmul.msk.f32.gmra.mxu0 %vm254_vm0, %v3672_v34 }
 0x100   : > { %v832_v32 = vpop.f32.mrf.mxu2 }
 0x101   : > { %v920_v37 = vadd.f32 %v832_v32, %v590_v29  ;;  %v1110_v22 = vpop.f32.mrf.mxu3  ;;  %v592_v46 = vpop.f32.mrf.mxu1  ;;  %v4081_v32 = vld [vmem:[%s3546_s19 + $0x10a] sm:$0xff] }
 0x102   : > { %v593_v34 = vadd.f32 %v592_v46, %v3922_v0 }
 0x103   : > { %v1198_v8 = vadd.f32 %v1110_v22, %v920_v37  ;;  %v4084_v22 = vld [vmem:[%s3546_s19 + $0x120] sm:$0xff] }
 0x104   : > { %v1388_v33 = vpop.f32.mrf.mxu0  ;;  %2867 = vmatmul.msk.f32.gmra.mxu1 %vm254_vm0, %v4033_v13 }
 0x105   : > { %v4069_v28 = vadd.f32 %v1385_v3, %v1198_v8  ;;  %2900 = vmatmul.msk.f32.gmra.mxu2 %vm254_vm0, %v4064_v16 }
 0x106   : > { %2965 = vmatmul.msk.f32.gmra.mxu3 %vm254_vm0, %v4067_v18 }
 0x107   : > { %4754 = vst [vmem:[#allocation37_spill] sm:$0xff] %v4069_v28  ;;  %3030 = vmatmul.msk.f32.gmra.mxu0 %vm254_vm0, %v3692_v38 }
 0x108   : > { %v835_v45 = vpop.f32.mrf.mxu2 }
 0x109   : > { %v921_v10 = vadd.f32 %v835_v45, %v593_v34  ;;  %v1113_v29 = vpop.f32.mrf.mxu3  ;;  %v595_v3 = vpop.f32.mrf.mxu1  ;;  %v4098_v45 = vld [vmem:[%s3546_s19 + $0x112] sm:$0xff] }
 0x10a   : > { %v596_v38 = vadd.f32 %v595_v3, %v3944_v26 }
 0x10b   : > { %v1199_v37 = vadd.f32 %v1113_v29, %v921_v10  ;;  %v4101_v29 = vld [vmem:[%s3546_s19 + $0x128] sm:$0xff] }
 0x10c   : > { %v1391_v8 = vpop.f32.mrf.mxu0  ;;  %2868 = vmatmul.msk.f32.gmra.mxu1 %vm254_vm0, %v4050_v14 }
 0x10d   : > { %v4086_v28 = vadd.f32 %v1388_v33, %v1199_v37  ;;  %2901 = vmatmul.msk.f32.gmra.mxu2 %vm254_vm0, %v4081_v32 }
 0x10e   : > { %2966 = vmatmul.msk.f32.gmra.mxu3 %vm254_vm0, %v4084_v22 }
 0x10f   : > { %4755 = vst [vmem:[#allocation38_spill] sm:$0xff] %v4086_v28  ;;  %3031 = vmatmul.msk.f32.gmra.mxu0 %vm254_vm0, %v3555_v7 }
 0x110   : > { %v838_v0 = vpop.f32.mrf.mxu2 }
 0x111   : > { %v922_v46 = vadd.f32 %v838_v0, %v596_v38  ;;  %v1116_v34 = vpop.f32.mrf.mxu3  ;;  %v598_v33 = vpop.f32.mrf.mxu1  ;;  %v4115_v0 = vld [vmem:[%s3546_s19 + $0x122] sm:$0xff] }
 0x112   : > { %v599_v7 = vadd.f32 %v598_v33, %v3966_v12 }
 0x113   : > { %v1200_v10 = vadd.f32 %v1116_v34, %v922_v46  ;;  %v4118_v34 = vld [vmem:[%s3546_s19 + $0x138] sm:$0xff] }
 0x114   : > { %v1394_v37 = vpop.f32.mrf.mxu0  ;;  %2869 = vmatmul.msk.f32.gmra.mxu1 %vm254_vm0, %v4067_v18 }
 0x115   : > { %v4103_v28 = vadd.f32 %v1391_v8, %v1200_v10  ;;  %2902 = vmatmul.msk.f32.gmra.mxu2 %vm254_vm0, %v4098_v45 }
 0x116   : > { %2967 = vmatmul.msk.f32.gmra.mxu3 %vm254_vm0, %v4101_v29 }
 0x117   : > { %4756 = vst [vmem:[#allocation39_spill] sm:$0xff] %v4103_v28  ;;  %3032 = vmatmul.msk.f32.gmra.mxu0 %vm254_vm0, %v3572_v11 }
 0x118   : > { %v841_v26 = vpop.f32.mrf.mxu2 }
 0x119   : > { %v923_v3 = vadd.f32 %v841_v26, %v599_v7  ;;  %v1119_v38 = vpop.f32.mrf.mxu3  ;;  %v601_v8 = vpop.f32.mrf.mxu1  ;;  %v4132_v26 = vld [vmem:[%s3546_s19 + $0x12a] sm:$0xff] }
 0x11a   : > { %v602_v11 = vadd.f32 %v601_v8, %v3804_v59 }
 0x11b   : > { %v1201_v46 = vadd.f32 %v1119_v38, %v923_v3  ;;  %v4135_v38 = vld [vmem:[%s3546_s19 + $0x140] sm:$0xff] }
 0x11c   : > { %v1397_v10 = vpop.f32.mrf.mxu0  ;;  %2870 = vmatmul.msk.f32.gmra.mxu1 %vm254_vm0, %v4084_v22 }
 0x11d   : > { %v4120_v28 = vadd.f32 %v1394_v37, %v1201_v46  ;;  %2903 = vmatmul.msk.f32.gmra.mxu2 %vm254_vm0, %v4115_v0 }
 0x11e   : > { %2968 = vmatmul.msk.f32.gmra.mxu3 %vm254_vm0, %v4118_v34 }
 0x11f   : > { %4757 = vst [vmem:[#allocation40_spill] sm:$0xff] %v4120_v28  ;;  %3033 = vmatmul.msk.f32.gmra.mxu0 %vm254_vm0, %v3589_v15 }
 0x120   : > { %v844_v12 = vpop.f32.mrf.mxu2 }
 0x121   : > { %v924_v33 = vadd.f32 %v844_v12, %v602_v11  ;;  %v1122_v7 = vpop.f32.mrf.mxu3  ;;  %v604_v37 = vpop.f32.mrf.mxu1  ;;  %v4149_v12 = vld [vmem:[%s3546_s19 + $0x13a] sm:$0xff] }
 0x122   : > { %v605_v15 = vadd.f32 %v604_v37, %v3826_v1 }
 0x123   : > { %v1202_v3 = vadd.f32 %v1122_v7, %v924_v33  ;;  %v4152_v7 = vld [vmem:[%s3546_s19 + $0x150] sm:$0xff] }
 0x124   : > { %v1400_v46 = vpop.f32.mrf.mxu0  ;;  %2871 = vmatmul.msk.f32.gmra.mxu1 %vm254_vm0, %v4101_v29 }
 0x125   : > { %v4137_v28 = vadd.f32 %v1397_v10, %v1202_v3  ;;  %2904 = vmatmul.msk.f32.gmra.mxu2 %vm254_vm0, %v4132_v26 }
 0x126   : > { %2969 = vmatmul.msk.f32.gmra.mxu3 %vm254_vm0, %v4135_v38 }
 0x127   : > { %4758 = vst [vmem:[#allocation41_spill] sm:$0xff] %v4137_v28  ;;  %3034 = vmatmul.msk.f32.gmra.mxu0 %vm254_vm0, %v3606_v19 }
 0x128   : > { %v847_v59 = vpop.f32.mrf.mxu2 }
 0x129   : > { %v925_v8 = vadd.f32 %v847_v59, %v605_v15  ;;  %v1125_v11 = vpop.f32.mrf.mxu3  ;;  %v607_v10 = vpop.f32.mrf.mxu1  ;;  %v4166_v59 = vld [vmem:[%s3546_s19 + $0x142] sm:$0xff] }
 0x12a   : > { %v608_v19 = vadd.f32 %v607_v10, %v3848_v9 }
 0x12b   : > { %v1203_v33 = vadd.f32 %v1125_v11, %v925_v8  ;;  %v4169_v11 = vld [vmem:[%s3546_s19 + $0x158] sm:$0xff] }
 0x12c   : > { %v1403_v3 = vpop.f32.mrf.mxu0  ;;  %2872 = vmatmul.msk.f32.gmra.mxu1 %vm254_vm0, %v4118_v34 }
 0x12d   : > { %v4154_v28 = vadd.f32 %v1400_v46, %v1203_v33  ;;  %2905 = vmatmul.msk.f32.gmra.mxu2 %vm254_vm0, %v4149_v12 }
 0x12e   : > { %2970 = vmatmul.msk.f32.gmra.mxu3 %vm254_vm0, %v4152_v7 }
 0x12f   : > { %4759 = vst [vmem:[#allocation42_spill] sm:$0xff] %v4154_v28  ;;  %3035 = vmatmul.msk.f32.gmra.mxu0 %vm254_vm0, %v3623_v23 }
 0x130   : > { %v850_v1 = vpop.f32.mrf.mxu2 }
 0x131   : > { %v926_v37 = vadd.f32 %v850_v1, %v608_v19  ;;  %v1128_v15 = vpop.f32.mrf.mxu3  ;;  %v610_v46 = vpop.f32.mrf.mxu1  ;;  %v4183_v1 = vld [vmem:[%s3546_s19 + $0x152] sm:$0xff] }
 0x132   : > { %v611_v23 = vadd.f32 %v610_v46, %v3870_v25 }
 0x133   : > { %v1204_v8 = vadd.f32 %v1128_v15, %v926_v37  ;;  %v2939_v15 = vld [vmem:[%s3546_s19 + $0x168] sm:$0xff] }
 0x134   : > { %v1406_v33 = vpop.f32.mrf.mxu0  ;;  %2873 = vmatmul.msk.f32.gmra.mxu1 %vm254_vm0, %v4135_v38 }
 0x135   : > { %v4171_v28 = vadd.f32 %v1403_v3, %v1204_v8  ;;  %2906 = vmatmul.msk.f32.gmra.mxu2 %vm254_vm0, %v4166_v59 }
 0x136   : > { %2971 = vmatmul.msk.f32.gmra.mxu3 %vm254_vm0, %v4169_v11 }
 0x137   : > { %4760 = vst [vmem:[#allocation43_spill] sm:$0xff] %v4171_v28  ;;  %3036 = vmatmul.msk.f32.gmra.mxu0 %vm254_vm0, %v3652_v30 }
 0x138   : > { %v853_v9 = vpop.f32.mrf.mxu2 }
 0x139   : > { %v927_v10 = vadd.f32 %v853_v9, %v611_v23  ;;  %v1131_v19 = vpop.f32.mrf.mxu3  ;;  %v613_v3 = vpop.f32.mrf.mxu1 }
 0x13a   : > { %v614_v30 = vadd.f32 %v613_v3, %v3892_v42 }
 0x13b   : > { %v1205_v37 = vadd.f32 %v1131_v19, %v927_v10  ;;  %v2940_v19 = vld [vmem:[%s3546_s19 + $0x170] sm:$0xff] }
 0x13c   : > { %v1409_v8 = vpop.f32.mrf.mxu0  ;;  %2874 = vmatmul.msk.f32.gmra.mxu1 %vm254_vm0, %v4152_v7 }
 0x13d   : > { %v4186_v28 = vadd.f32 %v1406_v33, %v1205_v37  ;;  %2907 = vmatmul.msk.f32.gmra.mxu2 %vm254_vm0, %v4183_v1  ;;  %v4197_v33 = vld [vmem:[%s3546_s19 + $0x15a] sm:$0xff] }
 0x13e   : > { %2972 = vmatmul.msk.f32.gmra.mxu3 %vm254_vm0, %v2939_v15  ;;  %4762 = vst [vmem:[#allocation45_spill] sm:$0xff] %v4197_v33 }
 0x13f   : > { %4761 = vst [vmem:[#allocation44_spill] sm:$0xff] %v4186_v28  ;;  %3037 = vmatmul.msk.f32.gmra.mxu0 %vm254_vm0, %v3675_v35 }
 0x140   : > { %v856_v25 = vpop.f32.mrf.mxu2 }
 0x141   : > { %v928_v46 = vadd.f32 %v856_v25, %v614_v30  ;;  %v1134_v23 = vpop.f32.mrf.mxu3  ;;  %v616_v9 = vpop.f32.mrf.mxu1 }
 0x142   : > { %v617_v35 = vadd.f32 %v616_v9, %v3914_v41 }
 0x143   : > { %v1206_v10 = vadd.f32 %v1134_v23, %v928_v46  ;;  %v2941_v23 = vld [vmem:[%s3546_s19 + $0x180] sm:$0xff] }
 0x144   : > { %v1412_v37 = vpop.f32.mrf.mxu0  ;;  %2875 = vmatmul.msk.f32.gmra.mxu1 %vm254_vm0, %v4169_v11 }
 0x145   : > { %v4200_v28 = vadd.f32 %v1409_v8, %v1206_v10  ;;  %2908 = vmatmul.msk.f32.gmra.mxu2 %vm254_vm0, %v4197_v33  ;;  %v4211_v8 = vld [vmem:[%s3546_s19 + $0x16a] sm:$0xff] }
 0x146   : > { %2973 = vmatmul.msk.f32.gmra.mxu3 %vm254_vm0, %v2940_v19 }
 0x147   : > { %4763 = vst [vmem:[#allocation46_spill] sm:$0xff] %v4200_v28  ;;  %3038 = vmatmul.msk.f32.gmra.mxu0 %vm254_vm0, %v3695_v39  ;;  %v4215_v28 = vld [vmem:[%s3546_s19 + $0x181] sm:$0xff] }
 0x148   : > { %v859_v42 = vpop.f32.mrf.mxu2 }
 0x149   : > { %v929_v3 = vadd.f32 %v859_v42, %v617_v35  ;;  %v1137_v30 = vpop.f32.mrf.mxu3  ;;  %v619_v25 = vpop.f32.mrf.mxu1 }
 0x14a   : > { %v620_v39 = vadd.f32 %v619_v25, %v3936_v43 }
 0x14b   : > { %v1207_v46 = vadd.f32 %v1137_v30, %v929_v3  ;;  %v4227_v3 = vld [vmem:[%s3546_s19 + $0x172] sm:$0xff]  ;;  %v2942_v30 = vld [vmem:[%s3546_s19 + $0x188] sm:$0xff] }
 0x14c   : > { %v1415_v10 = vpop.f32.mrf.mxu0  ;;  %2876 = vmatmul.msk.f32.gmra.mxu1 %vm254_vm0, %v2939_v15  ;;  %v4231_v15 = vld [vmem:[%s3546_s19 + $0x189] sm:$0xff] }
 0x14d   : > { %v4217_v33 = vadd.f32 %v1412_v37, %v1207_v46  ;;  %2909 = vmatmul.msk.f32.gmra.mxu2 %vm254_vm0, %v4211_v8 }
 0x14e   : > { %2974 = vmatmul.msk.f32.gmra.mxu3 %vm254_vm0, %v2941_v23 }
 0x14f   : > { %4764 = vst [vmem:[#allocation47_spill] sm:$0xff] %v4217_v33  ;;  %3039 = vmatmul.msk.f32.gmra.mxu0 %vm254_vm0, %v4215_v28 }
 0x150   : > { %v862_v41 = vpop.f32.mrf.mxu2 }
 0x151   : > { %v930_v9 = vadd.f32 %v862_v41, %v620_v39  ;;  %v1140_v35 = vpop.f32.mrf.mxu3  ;;  %v622_v42 = vpop.f32.mrf.mxu1 }
 0x152   : > { %v623_v43 = vadd.f32 %v622_v42, %v3958_v20 }
 0x153   : > { %v1208_v37 = vadd.f32 %v1140_v35, %v930_v9 }
 0x154   : > { %v1418_v46 = vpop.f32.mrf.mxu0  ;;  %2877 = vmatmul.msk.f32.gmra.mxu1 %vm254_vm0, %v2940_v19 }
 0x155   : > { %v4233_v33 = vadd.f32 %v1415_v10, %v1208_v37  ;;  %2910 = vmatmul.msk.f32.gmra.mxu2 %vm254_vm0, %v4227_v3 }
 0x156   : > { %2975 = vmatmul.msk.f32.gmra.mxu3 %vm254_vm0, %v2942_v30 }
 0x157   : > { %3040 = vmatmul.msk.f32.gmra.mxu0 %vm254_vm0, %v4231_v15 }
 0x158   : > { %v865_v25 = vpop.f32.mrf.mxu2 }
 0x159   : > { %v931_v23 = vadd.f32 %v865_v25, %v623_v43  ;;  %v1143_v39 = vpop.f32.mrf.mxu3  ;;  %v625_v41 = vpop.f32.mrf.mxu1 }
 0x15a   : > { %v626_v20 = vadd.f32 %v625_v41, %v3822_v63 }
 0x15b   : > { %v1209_v9 = vadd.f32 %v1143_v39, %v931_v23 }
 0x15c   : > { %v1421_v35 = vpop.f32.mrf.mxu0  ;;  %3074 = vmatmul.msk.f32.vlgmr.msra.gmra.mxu1 %vm254_vm0, %v3723_v47 }
 0x15d   : > { %v4242_v10 = vadd.f32 %v1418_v46, %v1209_v9  ;;  %3139 = vmatmul.msk.f32.vlgmr.msra.gmra.mxu2 %vm254_vm0, %v3726_v48 }
 0x15e   : > { %3204 = vmatmul.msk.f32.vlgmr.msra.gmra.mxu3 %vm254_vm0, %v3626_v24 }
 0x15f   : > { %3269 = vmatmul.msk.f32.vlgmr.msra.gmra.mxu0 %vm254_vm0, %v3749_v51 }
 0x160   : > { %v868_v19 = vpop.f32.mrf.mxu2 }
 0x161   : > { %v932_v42 = vadd.f32 %v868_v19, %v626_v20  ;;  %v1146_v37 = vpop.f32.mrf.mxu3  ;;  %v628_v30 = vpop.f32.mrf.mxu1 }
 0x162   : > { %v629_v24 = vadd.f32 %v628_v30, %v3844_v5 }
 0x163   : > { %v1210_v46 = vadd.f32 %v1146_v37, %v932_v42 }
 0x164   : > { %v1424_v43 = vpop.f32.mrf.mxu0  ;;  %3075 = vmatmul.msk.f32.gmra.mxu1 %vm254_vm0, %v3736_v49 }
 0x165   : > { %v4253_v25 = vadd.f32 %v1421_v35, %v1210_v46  ;;  %3140 = vmatmul.msk.f32.gmra.mxu2 %vm254_vm0, %v3739_v50  ;;  %v3175_v46 = vld [vmem:[%s3546_s19 + $0x61] sm:$0xff] }
 0x166   : > { %3205 = vmatmul.msk.f32.gmra.mxu3 %vm254_vm0, %v3655_v31 }
 0x167   : > { %3270 = vmatmul.msk.f32.gmra.mxu0 %vm254_vm0, %v3763_v53 }
 0x168   : > { %v871_v47 = vpop.f32.mrf.mxu2 }
 0x169   : > { %v933_v48 = vadd.f32 %v871_v47, %v629_v24  ;;  %v1149_v63 = vpop.f32.mrf.mxu3  ;;  %v631_v23 = vpop.f32.mrf.mxu1 }
 0x16a   : > { %v632_v31 = vadd.f32 %v631_v23, %v3866_v17  ;;  %v3176_v23 = vld [vmem:[%s3546_s19 + $0x69] sm:$0xff] }
 0x16b   : > { %v1211_v39 = vadd.f32 %v1149_v63, %v933_v48 }
 0x16c   : > { %v1427_v41 = vpop.f32.mrf.mxu0  ;;  %3076 = vmatmul.msk.f32.gmra.mxu1 %vm254_vm0, %v3749_v51 }
 0x16d   : > { %v4264_v9 = vadd.f32 %v1424_v43, %v1211_v39  ;;  %3141 = vmatmul.msk.f32.gmra.mxu2 %vm254_vm0, %v3752_v52 }
 0x16e   : > { %3206 = vmatmul.msk.f32.gmra.mxu3 %vm254_vm0, %v3678_v36 }
 0x16f   : > { %3271 = vmatmul.msk.f32.gmra.mxu0 %vm254_vm0, %v3777_v55 }
 0x170   : > { %v874_v49 = vpop.f32.mrf.mxu2 }
 0x171   : > { %v934_v50 = vadd.f32 %v874_v49, %v632_v31  ;;  %v1152_v5 = vpop.f32.mrf.mxu3  ;;  %v634_v35 = vpop.f32.mrf.mxu1  ;;  %v4768_v31 = vld [vmem:[#allocation23_spill] sm:$0xff] }
 0x172   : > { %v635_v36 = vadd.f32 %v634_v35, %v3888_v21 }
 0x173   : > { %v1212_v20 = vadd.f32 %v1152_v5, %v934_v50 }
 0x174   : > { %v1430_v19 = vpop.f32.mrf.mxu0  ;;  %3077 = vmatmul.msk.f32.gmra.mxu1 %vm254_vm0, %v3763_v53 }
 0x175   : > { %v4275_v42 = vadd.f32 %v1427_v41, %v1212_v20  ;;  %3142 = vmatmul.msk.f32.gmra.mxu2 %vm254_vm0, %v3766_v54 }
 0x176   : > { %3207 = vmatmul.msk.f32.gmra.mxu3 %vm254_vm0, %v3698_v40  ;;  %v4765_v40 = vld [vmem:[#allocation19_spill] sm:$0xff] }
 0x177   : > { %3272 = vmatmul.msk.f32.gmra.mxu0 %vm254_vm0, %v3791_v57 }
 0x178   : > { %v877_v51 = vpop.f32.mrf.mxu2 }
 0x179   : > { %v935_v52 = vadd.f32 %v877_v51, %v635_v36  ;;  %v1155_v17 = vpop.f32.mrf.mxu3  ;;  %v637_v37 = vpop.f32.mrf.mxu1  ;;  %v3177_v36 = vld [vmem:[%s3546_s19 + $0x79] sm:$0xff] }
 0x17a   : > { %v638_v54 = vadd.f32 %v637_v37, %v4765_v40  ;;  %v4771_v37 = vld [vmem:[#allocation27_spill] sm:$0xff] }
 0x17b   : > { %v1213_v30 = vadd.f32 %v1155_v17, %v935_v52  ;;  %v4770_v17 = vld [vmem:[#allocation11_spill] sm:$0xff] }
 0x17c   : > { %v1433_v43 = vpop.f32.mrf.mxu0  ;;  %3078 = vmatmul.msk.f32.gmra.mxu1 %vm254_vm0, %v3777_v55  ;;  %v4766_v55 = vld [vmem:[#allocation5_spill] sm:$0xff] }
 0x17d   : > { %v4287_v53 = vadd.f32 %v1430_v19, %v1213_v30  ;;  %3143 = vmatmul.msk.f32.gmra.mxu2 %vm254_vm0, %v3780_v56  ;;  %v4767_v56 = vld [vmem:[#allocation8_spill] sm:$0xff] }
 0x17e   : > { %3208 = vmatmul.msk.f32.gmra.mxu3 %vm254_vm0, %v3175_v46 }
 0x17f   : > { %3273 = vmatmul.msk.f32.gmra.mxu0 %vm254_vm0, %v3807_v60 }
 0x180   : > { %v880_v21 = vpop.f32.mrf.mxu2 }
 0x181   : > { %v936_v24 = vadd.f32 %v880_v21, %v638_v54  ;;  %v1158_v47 = vpop.f32.mrf.mxu3  ;;  %v640_v48 = vpop.f32.mrf.mxu1 }
 0x182   : > { %v641_v49 = vadd.f32 %v640_v48, %v4768_v31 }
 0x183   : > { %v1214_v63 = vadd.f32 %v1158_v47, %v936_v24  ;;  %v3178_v24 = vld [vmem:[%s3546_s19 + $0x81] sm:$0xff] }
 0x184   : > { %v1436_v39 = vpop.f32.mrf.mxu0  ;;  %3079 = vmatmul.msk.f32.gmra.mxu1 %vm254_vm0, %v3791_v57  ;;  %v4769_v57 = vld [vmem:[#allocation6_spill] sm:$0xff] }
 0x185   : > { %v4298_v41 = vadd.f32 %v1433_v43, %v1214_v63  ;;  %3144 = vmatmul.msk.f32.gmra.mxu2 %vm254_vm0, %v4766_v55  ;;  %v4773_v63 = vld [vmem:[#allocation14_spill] sm:$0xff] }
 0x186   : > { %3209 = vmatmul.msk.f32.gmra.mxu3 %vm254_vm0, %v3176_v23  ;;  %v4774_v23 = vld [vmem:[#allocation30_spill] sm:$0xff] }
 0x187   : > { %3274 = vmatmul.msk.f32.gmra.mxu0 %vm254_vm0, %v4767_v56 }
 0x188   : > { %v883_v50 = vpop.f32.mrf.mxu2 }
 0x189   : > { %v937_v5 = vadd.f32 %v883_v50, %v641_v49  ;;  %v1161_v35 = vpop.f32.mrf.mxu3  ;;  %v643_v20 = vpop.f32.mrf.mxu1 }
 0x18a   : > { %v644_v30 = vadd.f32 %v643_v20, %v4771_v37 }
 0x18b   : > { %v1215_v19 = vadd.f32 %v1161_v35, %v937_v5  ;;  %v3179_v35 = vld [vmem:[%s3546_s19 + $0x91] sm:$0xff] }
 0x18c   : > { %v1439_v51 = vpop.f32.mrf.mxu0  ;;  %3080 = vmatmul.msk.f32.gmra.mxu1 %vm254_vm0, %v3807_v60  ;;  %v4772_v60 = vld [vmem:[#allocation9_spill] sm:$0xff] }
 0x18d   : > { %v4309_v52 = vadd.f32 %v1436_v39, %v1215_v19  ;;  %3145 = vmatmul.msk.f32.gmra.mxu2 %vm254_vm0, %v4769_v57 }
 0x18e   : > { %3210 = vmatmul.msk.f32.gmra.mxu3 %vm254_vm0, %v3177_v36  ;;  %v4776_v36 = vld [vmem:[#allocation17_spill] sm:$0xff] }
 0x18f   : > { %3275 = vmatmul.msk.f32.gmra.mxu0 %vm254_vm0, %v4770_v17 }
 0x190   : > { %v886_v46 = vpop.f32.mrf.mxu2 }
 0x191   : > { %v938_v43 = vadd.f32 %v886_v46, %v644_v30  ;;  %v1164_v40 = vpop.f32.mrf.mxu3  ;;  %v646_v54 = vpop.f32.mrf.mxu1 }
 0x192   : > { %v647_v39 = vadd.f32 %v646_v54, %v4774_v23  ;;  %v3180_v54 = vld [vmem:[%s3546_s19 + $0x99] sm:$0xff] }
 0x193   : > { %v1216_v21 = vadd.f32 %v1164_v40, %v938_v43 }
 0x194   : > { %v1442_v47 = vpop.f32.mrf.mxu0  ;;  %3081 = vmatmul.msk.f32.gmra.mxu1 %vm254_vm0, %v4767_v56  ;;  %v4775_v56 = vld [vmem:[#allocation12_spill] sm:$0xff] }
 0x195   : > { %v4320_v48 = vadd.f32 %v1439_v51, %v1216_v21  ;;  %3146 = vmatmul.msk.f32.gmra.mxu2 %vm254_vm0, %v4772_v60  ;;  %v4777_v51 = vld [vmem:[#allocation7_spill] sm:$0xff]  ;;  %v4780_v60 = vld [vmem:[#allocation10_spill] sm:$0xff] }
 0x196   : > { %3211 = vmatmul.msk.f32.gmra.mxu3 %vm254_vm0, %v3178_v24 }
 0x197   : > { %3276 = vmatmul.msk.f32.gmra.mxu0 %vm254_vm0, %v4773_v63 }
 0x198   : > { %v889_v55 = vpop.f32.mrf.mxu2 }
 0x199   : > { %v939_v31 = vadd.f32 %v889_v55, %v647_v39  ;;  %v1167_v49 = vpop.f32.mrf.mxu3  ;;  %v649_v50 = vpop.f32.mrf.mxu1 }
 0x19a   : > { %v650_v57 = vadd.f32 %v649_v50, %v4777_v51  ;;  %v4783_v51 = vld [vmem:[#allocation13_spill] sm:$0xff] }
 0x19b   : > { %v1217_v5 = vadd.f32 %v1167_v49, %v939_v31 }
 0x19c   : > { %v1445_v20 = vpop.f32.mrf.mxu0  ;;  %3082 = vmatmul.msk.f32.gmra.mxu1 %vm254_vm0, %v4770_v17  ;;  %v4778_v17 = vld [vmem:[#allocation15_spill] sm:$0xff] }
 0x19d   : > { %v4331_v19 = vadd.f32 %v1442_v47, %v1217_v5  ;;  %3147 = vmatmul.msk.f32.gmra.mxu2 %vm254_vm0, %v4775_v56  ;;  %v4779_v47 = vld [vmem:[#allocation21_spill] sm:$0xff]  ;;  %v3181_v5 = vld [vmem:[%s3546_s19 + $0xa9] sm:$0xff] }
 0x19e   : > { %3212 = vmatmul.msk.f32.gmra.mxu3 %vm254_vm0, %v3179_v35  ;;  %v4782_v56 = vld [vmem:[#allocation25_spill] sm:$0xff] }
 0x19f   : > { %3277 = vmatmul.msk.f32.gmra.mxu0 %vm254_vm0, %v4776_v36 }
 0x1a0   : > { %v892_v37 = vpop.f32.mrf.mxu2 }
 0x1a1   : > { %v940_v30 = vadd.f32 %v892_v37, %v650_v57  ;;  %v1170_v46 = vpop.f32.mrf.mxu3  ;;  %v652_v43 = vpop.f32.mrf.mxu1 }
 0x1a2   : > { %v653_v23 = vadd.f32 %v652_v43, %v4780_v60  ;;  %v4785_v60 = vld [vmem:[#allocation29_spill] sm:$0xff] }
 0x1a3   : > { %v1218_v40 = vadd.f32 %v1170_v46, %v940_v30 }
 0x1a4   : > { %v1448_v21 = vpop.f32.mrf.mxu0  ;;  %3083 = vmatmul.msk.f32.gmra.mxu1 %vm254_vm0, %v4773_v63  ;;  %v4781_v63 = vld [vmem:[#allocation18_spill] sm:$0xff] }
 0x1a5   : > { %v4342_v24 = vadd.f32 %v1445_v20, %v1218_v40  ;;  %3148 = vmatmul.msk.f32.gmra.mxu2 %vm254_vm0, %v4778_v17 }
 0x1a6   : > { %3213 = vmatmul.msk.f32.gmra.mxu3 %vm254_vm0, %v3180_v54  ;;  %v3182_v54 = vld [vmem:[%s3546_s19 + $0xb1] sm:$0xff] }
 0x1a7   : > { %3278 = vmatmul.msk.f32.gmra.mxu0 %vm254_vm0, %v4779_v47 }
 0x1a8   : > { %v895_v39 = vpop.f32.mrf.mxu2 }
 0x1a9   : > { %v941_v55 = vadd.f32 %v895_v39, %v653_v23  ;;  %v1173_v31 = vpop.f32.mrf.mxu3  ;;  %v655_v49 = vpop.f32.mrf.mxu1  ;;  %v4786_v23 = vld [vmem:[#allocation16_spill] sm:$0xff] }
 0x1aa   : > { %v656_v57 = vadd.f32 %v655_v49, %v4783_v51 }
 0x1ab   : > { %v1219_v50 = vadd.f32 %v1173_v31, %v941_v55 }
 0x1ac   : > { %v1451_v35 = vpop.f32.mrf.mxu0  ;;  %3084 = vmatmul.msk.f32.gmra.mxu1 %vm254_vm0, %v4776_v36  ;;  %v4784_v36 = vld [vmem:[#allocation22_spill] sm:$0xff] }
 0x1ad   : > { %v4353_v20 = vadd.f32 %v1448_v21, %v1219_v50  ;;  %3149 = vmatmul.msk.f32.gmra.mxu2 %vm254_vm0, %v4781_v63 }
 0x1ae   : > { %3214 = vmatmul.msk.f32.gmra.mxu3 %vm254_vm0, %v3181_v5 }
 0x1af   : > { %3279 = vmatmul.msk.f32.gmra.mxu0 %vm254_vm0, %v4782_v56 }
 0x1b0   : > { %v898_v37 = vpop.f32.mrf.mxu2 }
 0x1b1   : > { %v942_v30 = vadd.f32 %v898_v37, %v656_v57  ;;  %v1176_v46 = vpop.f32.mrf.mxu3  ;;  %v658_v43 = vpop.f32.mrf.mxu1  ;;  %v4788_v57 = vld [vmem:[#allocation32_spill] sm:$0xff] }
 0x1b2   : > { %v659_v39 = vadd.f32 %v658_v43, %v4786_v23  ;;  %v4789_v37 = vld [vmem:[#allocation20_spill] sm:$0xff] }
 0x1b3   : > { %v1220_v40 = vadd.f32 %v1176_v46, %v942_v30 }
 0x1b4   : > { %v1454_v21 = vpop.f32.mrf.mxu0  ;;  %3085 = vmatmul.msk.f32.gmra.mxu1 %vm254_vm0, %v4779_v47  ;;  %v4787_v47 = vld [vmem:[#allocation26_spill] sm:$0xff] }
 0x1b5   : > { %v4364_v17 = vadd.f32 %v1451_v35, %v1220_v40  ;;  %3150 = vmatmul.msk.f32.gmra.mxu2 %vm254_vm0, %v4784_v36  ;;  %v3183_v35 = vld [vmem:[%s3546_s19 + $0xc1] sm:$0xff]  ;;  %v3184_v36 = vld [vmem:[%s3546_s19 + $0xc9] sm:$0xff] }
 0x1b6   : > { %3215 = vmatmul.msk.f32.gmra.mxu3 %vm254_vm0, %v3182_v54 }
 0x1b7   : > { %3280 = vmatmul.msk.f32.gmra.mxu0 %vm254_vm0, %v4785_v60 }
 0x1b8   : > { %v901_v55 = vpop.f32.mrf.mxu2 }
 0x1b9   : > { %v943_v31 = vadd.f32 %v901_v55, %v659_v39  ;;  %v1179_v49 = vpop.f32.mrf.mxu3  ;;  %v661_v50 = vpop.f32.mrf.mxu1 }
 0x1ba   : > { %v662_v30 = vadd.f32 %v661_v50, %v4789_v37 }
 0x1bb   : > { %v1221_v5 = vadd.f32 %v1179_v49, %v943_v31 }
 0x1bc   : > { %v1457_v63 = vpop.f32.mrf.mxu0  ;;  %3086 = vmatmul.msk.f32.gmra.mxu1 %vm254_vm0, %v4782_v56  ;;  %v4790_v56 = vld [vmem:[#allocation24_spill] sm:$0xff] }
 0x1bd   : > { %v4375_v51 = vadd.f32 %v1454_v21, %v1221_v5  ;;  %3151 = vmatmul.msk.f32.gmra.mxu2 %vm254_vm0, %v4787_v47 }
 0x1be   : > { %3216 = vmatmul.msk.f32.gmra.mxu3 %vm254_vm0, %v3183_v35 }
 0x1bf   : > { %3281 = vmatmul.msk.f32.gmra.mxu0 %vm254_vm0, %v4788_v57 }
 0x1c0   : > { %v904_v46 = vpop.f32.mrf.mxu2 }
 0x1c1   : > { %v944_v43 = vadd.f32 %v904_v46, %v662_v30  ;;  %v1182_v40 = vpop.f32.mrf.mxu3  ;;  %v664_v54 = vpop.f32.mrf.mxu1 }
 0x1c2   : > { %v665_v55 = vadd.f32 %v664_v54, %v4790_v56 }
 0x1c3   : > { %v1222_v21 = vadd.f32 %v1182_v40, %v944_v43 }
 0x1c4   : > { %v1460_v23 = vpop.f32.mrf.mxu0  ;;  %3087 = vmatmul.msk.f32.gmra.mxu1 %vm254_vm0, %v4785_v60 }
 0x1c5   : > { %v4386_v39 = vadd.f32 %v1457_v63, %v1222_v21  ;;  %3152 = vmatmul.msk.f32.gmra.mxu2 %vm254_vm0, %v3964_v44  ;;  %v3185_v63 = vld [vmem:[%s3546_s19 + $0xd9] sm:$0xff]  ;;  %v3186_v21 = vld [vmem:[%s3546_s19 + $0xe1] sm:$0xff] }
 0x1c6   : > { %3217 = vmatmul.msk.f32.gmra.mxu3 %vm254_vm0, %v3184_v36  ;;  %v4791_v44 = vld [vmem:[#allocation28_spill] sm:$0xff] }
 0x1c7   : > { %3282 = vmatmul.msk.f32.gmra.mxu0 %vm254_vm0, %v3996_v2 }
 0x1c8   : > { %v907_v31 = vpop.f32.mrf.mxu2 }
 0x1c9   : > { %v945_v49 = vadd.f32 %v907_v31, %v665_v55  ;;  %v1185_v50 = vpop.f32.mrf.mxu3  ;;  %v667_v5 = vpop.f32.mrf.mxu1 }
 0x1ca   : > { %v668_v60 = vadd.f32 %v667_v5, %v4791_v44  ;;  %v3187_v5 = vld [vmem:[%s3546_s19 + $0xf1] sm:$0xff] }
 0x1cb   : > { %v1223_v35 = vadd.f32 %v1185_v50, %v945_v49 }
 0x1cc   : > { %v1463_v47 = vpop.f32.mrf.mxu0  ;;  %3088 = vmatmul.msk.f32.gmra.mxu1 %vm254_vm0, %v4788_v57 }
 0x1cd   : > { %v4397_v37 = vadd.f32 %v1460_v23, %v1223_v35  ;;  %3153 = vmatmul.msk.f32.gmra.mxu2 %vm254_vm0, %v3984_v61  ;;  %v4792_v61 = vld [vmem:[#allocation31_spill] sm:$0xff] }
 0x1ce   : > { %3218 = vmatmul.msk.f32.gmra.mxu3 %vm254_vm0, %v3185_v63 }
 0x1cf   : > { %3283 = vmatmul.msk.f32.gmra.mxu0 %vm254_vm0, %v4013_v27 }
 0x1d0   : > { %v910_v30 = vpop.f32.mrf.mxu2 }
 0x1d1   : > { %v946_v46 = vadd.f32 %v910_v30, %v668_v60  ;;  %v1188_v43 = vpop.f32.mrf.mxu3  ;;  %v670_v40 = vpop.f32.mrf.mxu1 }
 0x1d2   : > { %v671_v57 = vadd.f32 %v670_v40, %v4792_v61 }
 0x1d3   : > { %v1224_v54 = vadd.f32 %v1188_v43, %v946_v46  ;;  %v3188_v43 = vld [vmem:[%s3546_s19 + $0xf9] sm:$0xff] }
 0x1d4   : > { %v1466_v36 = vpop.f32.mrf.mxu0  ;;  %3089 = vmatmul.msk.f32.gmra.mxu1 %vm254_vm0, %v3996_v2 }
 0x1d5   : > { %v4408_v23 = vadd.f32 %v1463_v47, %v1224_v54  ;;  %3154 = vmatmul.msk.f32.gmra.mxu2 %vm254_vm0, %v3999_v58  ;;  %v4793_v58 = vld [vmem:[#allocation33_spill] sm:$0xff]  ;;  %v4794_v54 = vld [vmem:[#allocation34_spill] sm:$0xff] }
 0x1d6   : > { %3219 = vmatmul.msk.f32.gmra.mxu3 %vm254_vm0, %v3186_v21 }
 0x1d7   : > { %3284 = vmatmul.msk.f32.gmra.mxu0 %vm254_vm0, %v4030_v62 }
 0x1d8   : > { %v913_v56 = vpop.f32.mrf.mxu2 }
 0x1d9   : > { %v947_v55 = vadd.f32 %v913_v56, %v671_v57  ;;  %v1191_v31 = vpop.f32.mrf.mxu3  ;;  %v1648_v49 = vpop.f32.mrf.mxu1 }
 0x1da   : > { %v1744_v63 = vadd.f32 %v1648_v49, %v4793_v58 }
 0x1db   : > { %v1225_v50 = vadd.f32 %v1191_v31, %v947_v55 }
 0x1dc   : > { %v2476_v2 = vpop.f32.mrf.mxu0  ;;  %3090 = vmatmul.msk.f32.gmra.mxu1 %vm254_vm0, %v4013_v27 }
 0x1dd   : > { %v4419_v35 = vadd.f32 %v1466_v36, %v1225_v50  ;;  %3155 = vmatmul.msk.f32.gmra.mxu2 %vm254_vm0, %v4016_v6  ;;  %v4436_v6 = vld [vmem:[%s4693_s2] ss:$0 sm:$0xff] }
 0x1de   : > { %3220 = vmatmul.msk.f32.gmra.mxu3 %vm254_vm0, %v3187_v5  ;;  %v4795_v5 = vld [vmem:[#allocation35_spill] sm:$0xff] }
 0x1df   : > { %3285 = vmatmul.msk.f32.gmra.mxu0 %vm254_vm0, %v4047_v4 }
 0x1e0   : > { %v1926_v47 = vpop.f32.mrf.mxu2 }
 0x1e1   : > { %v2022_v44 = vadd.f32 %v1926_v47, %v1744_v63  ;;  %v2201_v60 = vpop.f32.mrf.mxu3  ;;  %v1651_v30 = vpop.f32.mrf.mxu1 }
 0x1e2   : > { %v1745_v21 = vadd.f32 %v1651_v30, %v4794_v54 }
 0x1e3   : > { %v2297_v46 = vadd.f32 %v2201_v60, %v2022_v44 }
 0x1e4   : > { %v2479_v40 = vpop.f32.mrf.mxu0  ;;  %3091 = vmatmul.msk.f32.gmra.mxu1 %vm254_vm0, %v4030_v62 }
 0x1e5   : > { %v2572_v27 = vadd.f32 %v2476_v2, %v2297_v46  ;;  %3156 = vmatmul.msk.f32.gmra.mxu2 %vm254_vm0, %v4033_v13  ;;  %v3189_v13 = vld [vmem:[%s3546_s19 + $0x109] sm:$0xff]  ;;  %v3190_v46 = vld [vmem:[%s3546_s19 + $0x111] sm:$0xff] }
 0x1e6   : > { %3221 = vmatmul.msk.f32.gmra.mxu3 %vm254_vm0, %v3188_v43 }
 0x1e7   : > { %3286 = vmatmul.msk.f32.gmra.mxu0 %vm254_vm0, %v4064_v16  ;;  %v2604_v36 = vmul.f32 0.23570226, %v2572_v27 }
 0x1e8   : > { %v1929_v61 = vpop.f32.mrf.mxu2 }
 0x1e9   : > { %v2640_v57 = vadd.f32 %v4436_v6, %v2604_v36  ;;  %v2023_v56 = vadd.f32 %v1929_v61, %v1745_v21  ;;  %v2204_v55 = vpop.f32.mrf.mxu3  ;;  %v1654_v31 = vpop.f32.mrf.mxu1 }
 0x1ea   : > { %v1746_v2 = vadd.f32 %v1654_v31, %v4795_v5 }
 0x1eb   : > { %2672 = vst [vmem:[%s4447_s9] sm:$0xff] %v2640_v57  ;;  %v2298_v62 = vadd.f32 %v2204_v55, %v2023_v56  ;;  %v3191_v55 = vld [vmem:[%s3546_s19 + $0x121] sm:$0xff] }
 0x1ec   : > { %v2482_v49 = vpop.f32.mrf.mxu0  ;;  %3092 = vmatmul.msk.f32.gmra.mxu1 %vm254_vm0, %v4047_v4 }
 0x1ed   : > { %v2573_v50 = vadd.f32 %v2479_v40, %v2298_v62  ;;  %3157 = vmatmul.msk.f32.gmra.mxu2 %vm254_vm0, %v4050_v14  ;;  %v4796_v40 = vld [vmem:[#allocation36_spill] sm:$0xff]  ;;  %v4797_v62 = vld [vmem:[#allocation37_spill] sm:$0xff] }
 0x1ee   : > { %3222 = vmatmul.msk.f32.gmra.mxu3 %vm254_vm0, %v3189_v13 }
 0x1ef   : > { %3287 = vmatmul.msk.f32.gmra.mxu0 %vm254_vm0, %v4081_v32  ;;  %v2605_v58 = vmul.f32 0.23570226, %v2573_v50 }
 0x1f0   : > { %v1932_v63 = vpop.f32.mrf.mxu2 }
 0x1f1   : > { %v2641_v47 = vadd.f32 %v4436_v6, %v2605_v58  ;;  %v2024_v44 = vadd.f32 %v1932_v63, %v1746_v2  ;;  %v2207_v60 = vpop.f32.mrf.mxu3  ;;  %v1657_v30 = vpop.f32.mrf.mxu1 }
 0x1f2   : > { %v1747_v27 = vadd.f32 %v1657_v30, %v4796_v40 }
 0x1f3   : > { %2673 = vst [vmem:[%s4447_s9 + $0x8] sm:$0xff] %v2641_v47  ;;  %v2299_v4 = vadd.f32 %v2207_v60, %v2024_v44  ;;  %v3192_v47 = vld [vmem:[%s3546_s19 + $0x129] sm:$0xff] }
 0x1f4   : > { %v2485_v14 = vpop.f32.mrf.mxu0  ;;  %3093 = vmatmul.msk.f32.gmra.mxu1 %vm254_vm0, %v4064_v16  ;;  %v4798_v60 = vld [vmem:[#allocation38_spill] sm:$0xff] }
 0x1f5   : > { %v2574_v43 = vadd.f32 %v2482_v49, %v2299_v4  ;;  %3158 = vmatmul.msk.f32.gmra.mxu2 %vm254_vm0, %v4067_v18 }
 0x1f6   : > { %3223 = vmatmul.msk.f32.gmra.mxu3 %vm254_vm0, %v3190_v46 }
 0x1f7   : > { %3288 = vmatmul.msk.f32.gmra.mxu0 %vm254_vm0, %v4098_v45  ;;  %v2606_v54 = vmul.f32 0.23570226, %v2574_v43 }
 0x1f8   : > { %v1935_v21 = vpop.f32.mrf.mxu2 }
 0x1f9   : > { %v2642_v36 = vadd.f32 %v4436_v6, %v2606_v54  ;;  %v2025_v61 = vadd.f32 %v1935_v21, %v1747_v27  ;;  %v2210_v57 = vpop.f32.mrf.mxu3  ;;  %v1660_v56 = vpop.f32.mrf.mxu1  ;;  %v3193_v54 = vld [vmem:[%s3546_s19 + $0x139] sm:$0xff] }
 0x1fa   : > { %v1748_v13 = vadd.f32 %v1660_v56, %v4797_v62  ;;  %v3194_v62 = vld [vmem:[%s3546_s19 + $0x141] sm:$0xff] }
 0x1fb   : > { %2674 = vst [vmem:[%s4447_s9 + $0x10] sm:$0xff] %v2642_v36  ;;  %v2300_v16 = vadd.f32 %v2210_v57, %v2025_v61  ;;  %v4799_v36 = vld [vmem:[#allocation39_spill] sm:$0xff] }
 0x1fc   : > { %v2488_v18 = vpop.f32.mrf.mxu0  ;;  %3094 = vmatmul.msk.f32.gmra.mxu1 %vm254_vm0, %v4081_v32 }
 0x1fd   : > { %v2575_v31 = vadd.f32 %v2485_v14, %v2300_v16  ;;  %3159 = vmatmul.msk.f32.gmra.mxu2 %vm254_vm0, %v4084_v22 }
 0x1fe   : > { %3224 = vmatmul.msk.f32.gmra.mxu3 %vm254_vm0, %v3191_v55 }
 0x1ff   : > { %3289 = vmatmul.msk.f32.gmra.mxu0 %vm254_vm0, %v4115_v0  ;;  %v2607_v49 = vmul.f32 0.23570226, %v2575_v31 }
 0x200   : > { %v1938_v50 = vpop.f32.mrf.mxu2 }
 0x201   : > { %v2643_v5 = vadd.f32 %v4436_v6, %v2607_v49  ;;  %v2026_v2 = vadd.f32 %v1938_v50, %v1748_v13  ;;  %v2213_v58 = vpop.f32.mrf.mxu3  ;;  %v1663_v63 = vpop.f32.mrf.mxu1  ;;  %v4800_v49 = vld [vmem:[#allocation40_spill] sm:$0xff] }
 0x202   : > { %v1749_v30 = vadd.f32 %v1663_v63, %v4798_v60  ;;  %v4801_v60 = vld [vmem:[#allocation41_spill] sm:$0xff] }
 0x203   : > { %2675 = vst [vmem:[%s4447_s9 + $0x18] sm:$0xff] %v2643_v5  ;;  %v2301_v32 = vadd.f32 %v2213_v58, %v2026_v2 }
 0x204   : > { %v2491_v22 = vpop.f32.mrf.mxu0  ;;  %3095 = vmatmul.msk.f32.gmra.mxu1 %vm254_vm0, %v4098_v45 }
 0x205   : > { %v2576_v44 = vadd.f32 %v2488_v18, %v2301_v32  ;;  %3160 = vmatmul.msk.f32.gmra.mxu2 %vm254_vm0, %v4101_v29 }
 0x206   : > { %3225 = vmatmul.msk.f32.gmra.mxu3 %vm254_vm0, %v3192_v47 }
 0x207   : > { %3290 = vmatmul.msk.f32.gmra.mxu0 %vm254_vm0, %v4132_v26  ;;  %v2608_v4 = vmul.f32 0.23570226, %v2576_v44 }
 0x208   : > { %v1941_v46 = vpop.f32.mrf.mxu2 }
 0x209   : > { %v2644_v14 = vadd.f32 %v4436_v6, %v2608_v4  ;;  %v2027_v43 = vadd.f32 %v1941_v46, %v1749_v30  ;;  %v2216_v40 = vpop.f32.mrf.mxu3  ;;  %v1666_v27 = vpop.f32.mrf.mxu1 }
 0x20a   : > { %v1750_v61 = vadd.f32 %v1666_v27, %v4799_v36 }
 0x20b   : > { %2676 = vst [vmem:[%s4447_s9 + $0x20] sm:$0xff] %v2644_v14  ;;  %v2302_v45 = vadd.f32 %v2216_v40, %v2027_v43 }
 0x20c   : > { %v2494_v29 = vpop.f32.mrf.mxu0  ;;  %3096 = vmatmul.msk.f32.gmra.mxu1 %vm254_vm0, %v4115_v0 }
 0x20d   : > { %v2577_v21 = vadd.f32 %v2491_v22, %v2302_v45  ;;  %3161 = vmatmul.msk.f32.gmra.mxu2 %vm254_vm0, %v4118_v34  ;;  %v3195_v22 = vld [vmem:[%s3546_s19 + $0x151] sm:$0xff]  ;;  %v3196_v45 = vld [vmem:[%s3546_s19 + $0x159] sm:$0xff] }
 0x20e   : > { %3226 = vmatmul.msk.f32.gmra.mxu3 %vm254_vm0, %v3193_v54 }
 0x20f   : > { %3291 = vmatmul.msk.f32.gmra.mxu0 %vm254_vm0, %v4149_v12  ;;  %v2609_v57 = vmul.f32 0.23570226, %v2577_v21 }
 0x210   : > { %v1944_v56 = vpop.f32.mrf.mxu2 }
 0x211   : > { %v2645_v16 = vadd.f32 %v4436_v6, %v2609_v57  ;;  %v2028_v55 = vadd.f32 %v1944_v56, %v1750_v61  ;;  %v2219_v18 = vpop.f32.mrf.mxu3  ;;  %v1669_v31 = vpop.f32.mrf.mxu1 }
 0x212   : > { %v1751_v50 = vadd.f32 %v1669_v31, %v4800_v49  ;;  %v3132_v31 = vld [vmem:[%s3546_s19 + $0x168] sm:$0xff] }
 0x213   : > { %2677 = vst [vmem:[%s4447_s9 + $0x28] sm:$0xff] %v2645_v16  ;;  %v2303_v0 = vadd.f32 %v2219_v18, %v2028_v55  ;;  %v3067_v18 = vld [vmem:[%s3546_s19 + $0x152] sm:$0xff] }
 0x214   : > { %v2497_v34 = vpop.f32.mrf.mxu0  ;;  %3097 = vmatmul.msk.f32.gmra.mxu1 %vm254_vm0, %v4132_v26 }
 0x215   : > { %v2578_v13 = vadd.f32 %v2494_v29, %v2303_v0  ;;  %3162 = vmatmul.msk.f32.gmra.mxu2 %vm254_vm0, %v4135_v38  ;;  %v4803_v29 = vld [vmem:[#allocation42_spill] sm:$0xff] }
 0x216   : > { %3227 = vmatmul.msk.f32.gmra.mxu3 %vm254_vm0, %v3194_v62 }
 0x217   : > { %3292 = vmatmul.msk.f32.gmra.mxu0 %vm254_vm0, %v4166_v59  ;;  %v2610_v5 = vmul.f32 0.23570226, %v2578_v13 }
 0x218   : > { %v1947_v2 = vpop.f32.mrf.mxu2 }
 0x219   : > { %v2646_v58 = vadd.f32 %v4436_v6, %v2610_v5  ;;  %v2029_v63 = vadd.f32 %v1947_v2, %v1751_v50  ;;  %v2222_v32 = vpop.f32.mrf.mxu3  ;;  %v1672_v47 = vpop.f32.mrf.mxu1 }
 0x21a   : > { %v1752_v30 = vadd.f32 %v1672_v47, %v4801_v60  ;;  %v3133_v47 = vld [vmem:[%s3546_s19 + $0x170] sm:$0xff] }
 0x21b   : > { %2678 = vst [vmem:[%s4447_s9 + $0x30] sm:$0xff] %v2646_v58  ;;  %v2304_v26 = vadd.f32 %v2222_v32, %v2029_v63  ;;  %v3068_v32 = vld [vmem:[%s3546_s19 + $0x15a] sm:$0xff] }
 0x21c   : > { %v2500_v38 = vpop.f32.mrf.mxu0  ;;  %3098 = vmatmul.msk.f32.gmra.mxu1 %vm254_vm0, %v4149_v12 }
 0x21d   : > { %v2579_v44 = vadd.f32 %v2497_v34, %v2304_v26  ;;  %3163 = vmatmul.msk.f32.gmra.mxu2 %vm254_vm0, %v4152_v7  ;;  %v4804_v34 = vld [vmem:[#allocation43_spill] sm:$0xff] }
 0x21e   : > { %3228 = vmatmul.msk.f32.gmra.mxu3 %vm254_vm0, %v3195_v22  ;;  %v3198_v22 = vld [vmem:[%s3546_s19 + $0x171] sm:$0xff] }
 0x21f   : > { %3293 = vmatmul.msk.f32.gmra.mxu0 %vm254_vm0, %v4183_v1  ;;  %v2611_v4 = vmul.f32 0.23570226, %v2579_v44  ;;  %v4802_v1 = vld [vmem:[#allocation45_spill] sm:$0xff] }
 0x220   : > { %v1950_v46 = vpop.f32.mrf.mxu2 }
 0x221   : > { %v2647_v14 = vadd.f32 %v4436_v6, %v2611_v4  ;;  %v2030_v43 = vadd.f32 %v1950_v46, %v1752_v30  ;;  %v2225_v40 = vpop.f32.mrf.mxu3  ;;  %v1675_v27 = vpop.f32.mrf.mxu1 }
 0x222   : > { %v1753_v21 = vadd.f32 %v1675_v27, %v4803_v29  ;;  %v3069_v27 = vld [vmem:[%s3546_s19 + $0x16a] sm:$0xff] }
 0x223   : > { %2679 = vst [vmem:[%s4447_s9 + $0x38] sm:$0xff] %v2647_v14  ;;  %v2305_v12 = vadd.f32 %v2225_v40, %v2030_v43 }
 0x224   : > { %v2503_v7 = vpop.f32.mrf.mxu0  ;;  %3099 = vmatmul.msk.f32.gmra.mxu1 %vm254_vm0, %v4166_v59 }
 0x225   : > { %v2580_v54 = vadd.f32 %v2500_v38, %v2305_v12  ;;  %3164 = vmatmul.msk.f32.gmra.mxu2 %vm254_vm0, %v4169_v11  ;;  %v3197_v11 = vld [vmem:[%s3546_s19 + $0x169] sm:$0xff]  ;;  %v3134_v12 = vld [vmem:[%s3546_s19 + $0x180] sm:$0xff] }
 0x226   : > { %3229 = vmatmul.msk.f32.gmra.mxu3 %vm254_vm0, %v3196_v45 }
 0x227   : > { %3294 = vmatmul.msk.f32.gmra.mxu0 %vm254_vm0, %v4802_v1  ;;  %v2612_v36 = vmul.f32 0.23570226, %v2580_v54  ;;  %v3264_v54 = vld [vmem:[%s3546_s19 + $0x182] sm:$0xff] }
 0x228   : > { %v1953_v61 = vpop.f32.mrf.mxu2 }
 0x229   : > { %v2648_v57 = vadd.f32 %v4436_v6, %v2612_v36  ;;  %v2031_v56 = vadd.f32 %v1953_v61, %v1753_v21  ;;  %v2228_v16 = vpop.f32.mrf.mxu3  ;;  %v1678_v55 = vpop.f32.mrf.mxu1 }
 0x22a   : > { %v1754_v13 = vadd.f32 %v1678_v55, %v4804_v34  ;;  %v3070_v55 = vld [vmem:[%s3546_s19 + $0x172] sm:$0xff] }
 0x22b   : > { %2680 = vst [vmem:[%s4447_s9 + $0x40] sm:$0xff] %v2648_v57  ;;  %v2306_v59 = vadd.f32 %v2228_v16, %v2031_v56 }
 0x22c   : > { %v2506_v0 = vpop.f32.mrf.mxu0  ;;  %3100 = vmatmul.msk.f32.gmra.mxu1 %vm254_vm0, %v3067_v18  ;;  %v3135_v18 = vld [vmem:[%s3546_s19 + $0x188] sm:$0xff] }
 0x22d   : > { %v2581_v62 = vadd.f32 %v2503_v7, %v2306_v59  ;;  %3165 = vmatmul.msk.f32.gmra.mxu2 %vm254_vm0, %v3132_v31 }
 0x22e   : > { %3230 = vmatmul.msk.f32.gmra.mxu3 %vm254_vm0, %v3197_v11  ;;  %v3265_v11 = vld [vmem:[%s3546_s19 + $0x18a] sm:$0xff] }
 0x22f   : > { %3295 = vmatmul.msk.f32.gmra.mxu0 %vm254_vm0, %v4211_v8  ;;  %v2613_v49 = vmul.f32 0.23570226, %v2581_v62  ;;  %v4805_v8 = vld [vmem:[#allocation44_spill] sm:$0xff] }
 0x230   : > { %v1956_v50 = vpop.f32.mrf.mxu2 }
 0x231   : > { %v2649_v5 = vadd.f32 %v4436_v6, %v2613_v49  ;;  %v2032_v2 = vadd.f32 %v1956_v50, %v1754_v13  ;;  %v2231_v58 = vpop.f32.mrf.mxu3  ;;  %v1681_v63 = vpop.f32.mrf.mxu1 }
 0x232   : > { %v1755_v60 = vadd.f32 %v1681_v63, %v4805_v8 }
 0x233   : > { %2681 = vst [vmem:[%s4447_s9 + $0x48] sm:$0xff] %v2649_v5  ;;  %v2307_v26 = vadd.f32 %v2231_v58, %v2032_v2  ;;  %v3136_v58 = vld [vmem:[%s3546_s19 + $0x198] sm:$0xff] }
 0x234   : > { %v2509_v38 = vpop.f32.mrf.mxu0  ;;  %3101 = vmatmul.msk.f32.gmra.mxu1 %vm254_vm0, %v3068_v32  ;;  %v3201_v32 = vld [vmem:[%s3546_s19 + $0x199] sm:$0xff] }
 0x235   : > { %v2582_v44 = vadd.f32 %v2506_v0, %v2307_v26  ;;  %3166 = vmatmul.msk.f32.gmra.mxu2 %vm254_vm0, %v3133_v47  ;;  %v4807_v0 = vld [vmem:[#allocation47_spill] sm:$0xff]  ;;  %v3266_v26 = vld [vmem:[%s3546_s19 + $0x19a] sm:$0xff] }
 0x236   : > { %3231 = vmatmul.msk.f32.gmra.mxu3 %vm254_vm0, %v3198_v22 }
 0x237   : > { %3296 = vmatmul.msk.f32.gmra.mxu0 %vm254_vm0, %v4227_v3  ;;  %v2614_v30 = vmul.f32 0.23570226, %v2582_v44  ;;  %v4806_v3 = vld [vmem:[#allocation46_spill] sm:$0xff] }
 0x238   : > { %v1959_v4 = vpop.f32.mrf.mxu2 }
 0x239   : > { %v2650_v46 = vadd.f32 %v4436_v6, %v2614_v30  ;;  %v2033_v14 = vadd.f32 %v1959_v4, %v1755_v60  ;;  %v2234_v43 = vpop.f32.mrf.mxu3  ;;  %v1684_v40 = vpop.f32.mrf.mxu1 }
 0x23a   : > { %v1756_v29 = vadd.f32 %v1684_v40, %v4806_v3 }
 0x23b   : > { %2682 = vst [vmem:[%s4447_s9 + $0x50] sm:$0xff] %v2650_v46  ;;  %v2308_v45 = vadd.f32 %v2234_v43, %v2033_v14  ;;  %v3137_v46 = vld [vmem:[%s3546_s19 + $0x1a0] sm:$0xff] }
 0x23c   : > { %v2512_v7 = vpop.f32.mrf.mxu0  ;;  %3102 = vmatmul.msk.f32.gmra.mxu1 %vm254_vm0, %v3069_v27  ;;  %v3202_v43 = vld [vmem:[%s3546_s19 + $0x1a1] sm:$0xff] }
 0x23d   : > { %v2583_v1 = vadd.f32 %v2509_v38, %v2308_v45  ;;  %3167 = vmatmul.msk.f32.gmra.mxu2 %vm254_vm0, %v3134_v12  ;;  %v3267_v27 = vld [vmem:[%s3546_s19 + $0x1a2] sm:$0xff]  ;;  %s2719_s19 = scalar_lea.hbm %s4694_s3, %s3306_s10 }
 0x23e   : > { %3232 = vmatmul.msk.f32.gmra.mxu3 %vm254_vm0, %v4215_v28  ;;  %s2722_s23 = sshll.u32 %s2719_s19, 4  ;;  %s2723_s23 = int_to_ptr.hbm [resolvable:$true] %s2722_s23 }
 0x23f   : > { %3297 = vmatmul.msk.f32.gmra.mxu0 %vm254_vm0, %v3264_v54  ;;  %v2615_v21 = vmul.f32 0.23570226, %v2583_v1  ;;  %s3383_s26 = sshra.s32 %s2723_s23, 4  ;;  %s3384_s26 = int_to_ptr.hbm [resolvable:$true] %s3383_s26 }
 0x240   : > { %v1962_v36 = vpop.f32.mrf.mxu2  ;;  %s3385_s27 = scalar_lea.hbm %s3384_s26, 256  ;;  %p3390_p1 = scmp.lt.s32.totalorder %s3384_s26, %s4694_s3 }
 0x241   : > { %v2651_v61 = vadd.f32 %v4436_v6, %v2615_v21  ;;  %v2034_v57 = vadd.f32 %v1962_v36, %v1756_v29  ;;  %v2237_v56 = vpop.f32.mrf.mxu3  ;;  %v1687_v16 = vpop.f32.mrf.mxu1  ;;  %p3386_p12 = scmp.ne.s32.totalorder %s3384_s26, %s3385_s27  ;;  %p3391_p2 = scmp.lt.s32.totalorder %s3389_s30, %s3385_s27 }
 0x242   : > { %v1757_v62 = vadd.f32 %v1687_v16, %v4807_v0 }
 0x243   : > { %2683 = vst [vmem:[%s4447_s9 + $0x58] sm:$0xff] %v2651_v61  ;;  %v2309_v31 = vadd.f32 %v2237_v56, %v2034_v57  ;;  %p3387_p13 = pnand %p3386_p12, %p3511_p4  ;;  %p3392_p3 = por %p3391_p2, %p3390_p1 }
 0x244   : > { %v2515_v59 = vpop.f32.mrf.mxu0  ;;  %3103 = vmatmul.msk.f32.gmra.mxu1 %vm254_vm0, %v3070_v55 }
 0x245   : > { %v2584_v28 = vadd.f32 %v2512_v7, %v2309_v31  ;;  %3168 = vmatmul.msk.f32.gmra.mxu2 %vm254_vm0, %v3135_v18  ;;  %p3388_p0 = pneg %p3387_p13 }
 0x246   : > { %3233 = vmatmul.msk.f32.gmra.mxu3 %vm254_vm0, %v4231_v15 }
 0x247   : > { %3298 = vmatmul.msk.f32.gmra.mxu0 %vm254_vm0, %v3265_v11  ;;  %v2616_v34 = vmul.f32 0.23570226, %v2584_v28  ;;  %p3393_p5 = pnand %p3392_p3, %p3388_p0 }
 0x248   : > { %v1965_v13 = vpop.f32.mrf.mxu2 }
 0x249   : > { %v2652_v49 = vadd.f32 %v4436_v6, %v2616_v34  ;;  %v2035_v50 = vadd.f32 %v1965_v13, %v1757_v62  ;;  %v2240_v5 = vpop.f32.mrf.mxu3  ;;  %v1690_v2 = vpop.f32.mrf.mxu1 }
 0x24a   : > { %v1758_v22 = vadd.f32 %v1690_v2, %v4233_v33 }
 0x24b   : > { %2684 = vst [vmem:[%s4447_s9 + $0x60] sm:$0xff] %v2652_v49  ;;  %v2310_v63 = vadd.f32 %v2240_v5, %v2035_v50 }
 0x24c   : > { %v2518_v47 = vpop.f32.mrf.mxu0  ;;  %3104 = vmatmul.msk.f32.gmra.mxu1 %vm254_vm0, %v3264_v54 }
 0x24d   : > { %v2585_v15 = vadd.f32 %v2515_v59, %v2310_v63  ;;  %3169 = vmatmul.msk.f32.gmra.mxu2 %vm254_vm0, %v3136_v58 }
 0x24e   : > { %3234 = vmatmul.msk.f32.gmra.mxu3 %vm254_vm0, %v3201_v32 }
 0x24f   : > { %3299 = vmatmul.msk.f32.gmra.mxu0 %vm254_vm0, %v3266_v26  ;;  %v2617_v38 = vmul.f32 0.23570226, %v2585_v15 }
 0x250   : > { %v1968_v44 = vpop.f32.mrf.mxu2 }
 0x251   : > { %v2653_v8 = vadd.f32 %v4436_v6, %v2617_v38  ;;  %v2036_v60 = vadd.f32 %v1968_v44, %v1758_v22  ;;  %v2243_v30 = vpop.f32.mrf.mxu3  ;;  %v1693_v4 = vpop.f32.mrf.mxu1 }
 0x252   : > { %v1759_v33 = vadd.f32 %v1693_v4, %v4242_v10 }
 0x253   : > { %2685 = vst [vmem:[%s4447_s9 + $0x68] sm:$0xff] %v2653_v8  ;;  %v2311_v14 = vadd.f32 %v2243_v30, %v2036_v60 }
 0x254   : > { %v2521_v40 = vpop.f32.mrf.mxu0  ;;  %3105 = vmatmul.msk.f32.gmra.mxu1 %vm254_vm0, %v3265_v11 }
 0x255   : > { %v2586_v12 = vadd.f32 %v2518_v47, %v2311_v14  ;;  %3170 = vmatmul.msk.f32.gmra.mxu2 %vm254_vm0, %v3137_v46 }
 0x256   : > { %3235 = vmatmul.msk.f32.gmra.mxu3 %vm254_vm0, %v3202_v43 }
 0x257   : > { %3300 = vmatmul.msk.f32.gmra.mxu0 %vm254_vm0, %v3267_v27  ;;  %v2618_v45 = vmul.f32 0.23570226, %v2586_v12 }
 0x258   : > { %v1971_v7 = vpop.f32.mrf.mxu2 }
 0x259   : > { %v2654_v54 = vadd.f32 %v4436_v6, %v2618_v45  ;;  %v2037_v1 = vadd.f32 %v1971_v7, %v1759_v33  ;;  %v2246_v3 = vpop.f32.mrf.mxu3  ;;  %v1696_v29 = vpop.f32.mrf.mxu1 }
 0x25a   : > { %v1760_v57 = vadd.f32 %v1696_v29, %v4253_v25 }
 0x25b   : > { %2686 = vst [vmem:[%s4447_s9 + $0x70] sm:$0xff] %v2654_v54  ;;  %v2312_v21 = vadd.f32 %v2246_v3, %v2037_v1 }
 0x25c   : > { %v2524_v36 = vpop.f32.mrf.mxu0 }
 0x25d   : > { %v2587_v61 = vadd.f32 %v2521_v40, %v2312_v21 }
 0x25f   : > { %v2619_v56 = vmul.f32 0.23570226, %v2587_v61 }
 0x260   : > { %v1974_v16 = vpop.f32.mrf.mxu2 }
 0x261   : > { %v2655_v55 = vadd.f32 %v4436_v6, %v2619_v56  ;;  %v2038_v10 = vadd.f32 %v1974_v16, %v1760_v57  ;;  %v2249_v18 = vpop.f32.mrf.mxu3  ;;  %v1699_v31 = vpop.f32.mrf.mxu1 }
 0x262   : > { %v1761_v0 = vadd.f32 %v1699_v31, %v4264_v9 }
 0x263   : > { %2687 = vst [vmem:[%s4447_s9 + $0x78] sm:$0xff] %v2655_v55  ;;  %v2313_v59 = vadd.f32 %v2249_v18, %v2038_v10 }
 0x264   : > { %v2527_v11 = vpop.f32.mrf.mxu0 }
 0x265   : > { %v2588_v28 = vadd.f32 %v2524_v36, %v2313_v59 }
 0x267   : > { %v2620_v62 = vmul.f32 0.23570226, %v2588_v28 }
 0x268   : > { %v1977_v34 = vpop.f32.mrf.mxu2 }
 0x269   : > { %v2656_v13 = vadd.f32 %v4436_v6, %v2620_v62  ;;  %v2039_v25 = vadd.f32 %v1977_v34, %v1761_v0  ;;  %v2252_v49 = vpop.f32.mrf.mxu3  ;;  %v1702_v50 = vpop.f32.mrf.mxu1 }
 0x26a   : > { %v1762_v63 = vadd.f32 %v1702_v50, %v4275_v42 }
 0x26b   : > { %2688 = vst [vmem:[%s4447_s9 + $0x80] sm:$0xff] %v2656_v13  ;;  %v2314_v5 = vadd.f32 %v2252_v49, %v2039_v25 }
 0x26c   : > { %v2530_v2 = vpop.f32.mrf.mxu0 }
 0x26d   : > { %v2589_v58 = vadd.f32 %v2527_v11, %v2314_v5 }
 0x26f   : > { %v2621_v32 = vmul.f32 0.23570226, %v2589_v58 }
 0x270   : > { %v1980_v47 = vpop.f32.mrf.mxu2 }
 0x271   : > { %v2657_v26 = vadd.f32 %v4436_v6, %v2621_v32  ;;  %v2040_v9 = vadd.f32 %v1980_v47, %v1762_v63  ;;  %v2255_v15 = vpop.f32.mrf.mxu3  ;;  %v1705_v22 = vpop.f32.mrf.mxu1 }
 0x272   : > { %v1763_v60 = vadd.f32 %v1705_v22, %v4287_v53 }
 0x273   : > { %2689 = vst [vmem:[%s4447_s9 + $0x88] sm:$0xff] %v2657_v26  ;;  %v2315_v38 = vadd.f32 %v2255_v15, %v2040_v9 }
 0x274   : > { %v2533_v44 = vpop.f32.mrf.mxu0 }
 0x275   : > { %v2590_v8 = vadd.f32 %v2530_v2, %v2315_v38 }
 0x277   : > { %v2622_v30 = vmul.f32 0.23570226, %v2590_v8 }
 0x278   : > { %v1983_v4 = vpop.f32.mrf.mxu2 }
 0x279   : > { %v2658_v46 = vadd.f32 %v4436_v6, %v2622_v30  ;;  %v2041_v42 = vadd.f32 %v1983_v4, %v1763_v60  ;;  %v2258_v14 = vpop.f32.mrf.mxu3  ;;  %v1708_v43 = vpop.f32.mrf.mxu1 }
 0x27a   : > { %v1764_v33 = vadd.f32 %v1708_v43, %v4298_v41 }
 0x27b   : > { %2690 = vst [vmem:[%s4447_s9 + $0x90] sm:$0xff] %v2658_v46  ;;  %v2316_v40 = vadd.f32 %v2258_v14, %v2041_v42 }
 0x27c   : > { %v2536_v27 = vpop.f32.mrf.mxu0 }
 0x27d   : > { %v2591_v12 = vadd.f32 %v2533_v44, %v2316_v40 }
 0x27f   : > { %v2623_v45 = vmul.f32 0.23570226, %v2591_v12 }
 0x280   : > { %v1986_v7 = vpop.f32.mrf.mxu2 }
 0x281   : > { %v2659_v54 = vadd.f32 %v4436_v6, %v2623_v45  ;;  %v2042_v53 = vadd.f32 %v1986_v7, %v1764_v33  ;;  %v2261_v1 = vpop.f32.mrf.mxu3  ;;  %v1711_v3 = vpop.f32.mrf.mxu1 }
 0x282   : > { %v1765_v61 = vadd.f32 %v1711_v3, %v4309_v52 }
 0x283   : > { %2691 = vst [vmem:[%s4447_s9 + $0x98] sm:$0xff] %v2659_v54  ;;  %v2317_v29 = vadd.f32 %v2261_v1, %v2042_v53 }
 0x284   : > { %v2539_v21 = vpop.f32.mrf.mxu0 }
 0x285   : > { %v2592_v36 = vadd.f32 %v2536_v27, %v2317_v29 }
 0x287   : > { %v2624_v57 = vmul.f32 0.23570226, %v2592_v36 }
 0x288   : > { %v1989_v56 = vpop.f32.mrf.mxu2 }
 0x289   : > { %v2660_v16 = vadd.f32 %v4436_v6, %v2624_v57  ;;  %v2043_v41 = vadd.f32 %v1989_v56, %v1765_v61  ;;  %v2264_v55 = vpop.f32.mrf.mxu3  ;;  %v1714_v10 = vpop.f32.mrf.mxu1 }
 0x28a   : > { %v1766_v11 = vadd.f32 %v1714_v10, %v4320_v48 }
 0x28b   : > { %2692 = vst [vmem:[%s4447_s9 + $0xa0] sm:$0xff] %v2660_v16  ;;  %v2318_v18 = vadd.f32 %v2264_v55, %v2043_v41 }
 0x28c   : > { %v2542_v31 = vpop.f32.mrf.mxu0 }
 0x28d   : > { %v2593_v59 = vadd.f32 %v2539_v21, %v2318_v18 }
 0x28f   : > { %v2625_v28 = vmul.f32 0.23570226, %v2593_v59 }
 0x290   : > { %v1992_v0 = vpop.f32.mrf.mxu2 }
 0x291   : > { %v2661_v62 = vadd.f32 %v4436_v6, %v2625_v28  ;;  %v2044_v52 = vadd.f32 %v1992_v0, %v1766_v11  ;;  %v2267_v34 = vpop.f32.mrf.mxu3  ;;  %v1717_v13 = vpop.f32.mrf.mxu1 }
 0x292   : > { %v1767_v5 = vadd.f32 %v1717_v13, %v4331_v19 }
 0x293   : > { %2693 = vst [vmem:[%s4447_s9 + $0xa8] sm:$0xff] %v2661_v62  ;;  %v2319_v25 = vadd.f32 %v2267_v34, %v2044_v52 }
 0x294   : > { %v2545_v49 = vpop.f32.mrf.mxu0 }
 0x295   : > { %v2594_v50 = vadd.f32 %v2542_v31, %v2319_v25 }
 0x297   : > { %v2626_v2 = vmul.f32 0.23570226, %v2594_v50 }
 0x298   : > { %v1995_v58 = vpop.f32.mrf.mxu2 }
 0x299   : > { %v2662_v63 = vadd.f32 %v4436_v6, %v2626_v2  ;;  %v2045_v48 = vadd.f32 %v1995_v58, %v1767_v5  ;;  %v2270_v32 = vpop.f32.mrf.mxu3  ;;  %v1720_v47 = vpop.f32.mrf.mxu1 }
 0x29a   : > { %v1768_v22 = vadd.f32 %v1720_v47, %v4342_v24 }
 0x29b   : > { %2694 = vst [vmem:[%s4447_s9 + $0xb0] sm:$0xff] %v2662_v63  ;;  %v2320_v26 = vadd.f32 %v2270_v32, %v2045_v48 }
 0x29c   : > { %v2548_v9 = vpop.f32.mrf.mxu0 }
 0x29d   : > { %v2595_v15 = vadd.f32 %v2545_v49, %v2320_v26 }
 0x29f   : > { %v2627_v38 = vmul.f32 0.23570226, %v2595_v15 }
 0x2a0   : > { %v1998_v44 = vpop.f32.mrf.mxu2 }
 0x2a1   : > { %v2663_v8 = vadd.f32 %v4436_v6, %v2627_v38  ;;  %v2046_v19 = vadd.f32 %v1998_v44, %v1768_v22  ;;  %v2273_v60 = vpop.f32.mrf.mxu3  ;;  %v1723_v30 = vpop.f32.mrf.mxu1 }
 0x2a2   : > { %v1769_v14 = vadd.f32 %v1723_v30, %v4353_v20 }
 0x2a3   : > { %2695 = vst [vmem:[%s4447_s9 + $0xb8] sm:$0xff] %v2663_v8  ;;  %v2321_v4 = vadd.f32 %v2273_v60, %v2046_v19 }
 0x2a4   : > { %v2551_v46 = vpop.f32.mrf.mxu0 }
 0x2a5   : > { %v2596_v42 = vadd.f32 %v2548_v9, %v2321_v4 }
 0x2a7   : > { %v2628_v43 = vmul.f32 0.23570226, %v2596_v42 }
 0x2a8   : > { %v2001_v40 = vpop.f32.mrf.mxu2 }
 0x2a9   : > { %v2664_v27 = vadd.f32 %v4436_v6, %v2628_v43  ;;  %v2047_v24 = vadd.f32 %v2001_v40, %v1769_v14  ;;  %v2276_v12 = vpop.f32.mrf.mxu3  ;;  %v1726_v33 = vpop.f32.mrf.mxu1 }
 0x2aa   : > { %v1770_v53 = vadd.f32 %v1726_v33, %v4364_v17 }
 0x2ab   : > { %2696 = vst [vmem:[%s4447_s9 + $0xc0] sm:$0xff] %v2664_v27  ;;  %v2322_v45 = vadd.f32 %v2276_v12, %v2047_v24 }
 0x2ac   : > { %v2554_v7 = vpop.f32.mrf.mxu0 }
 0x2ad   : > { %v2597_v54 = vadd.f32 %v2551_v46, %v2322_v45 }
 0x2af   : > { %v2629_v1 = vmul.f32 0.23570226, %v2597_v54 }
 0x2b0   : > { %v2004_v3 = vpop.f32.mrf.mxu2 }
 0x2b1   : > { %v2665_v29 = vadd.f32 %v4436_v6, %v2629_v1  ;;  %v2048_v20 = vadd.f32 %v2004_v3, %v1770_v53  ;;  %v2279_v21 = vpop.f32.mrf.mxu3  ;;  %v1729_v36 = vpop.f32.mrf.mxu1 }
 0x2b2   : > { %v1771_v16 = vadd.f32 %v1729_v36, %v4375_v51 }
 0x2b3   : > { %2697 = vst [vmem:[%s4447_s9 + $0xc8] sm:$0xff] %v2665_v29  ;;  %v2323_v61 = vadd.f32 %v2279_v21, %v2048_v20 }
 0x2b4   : > { %v2557_v57 = vpop.f32.mrf.mxu0 }
 0x2b5   : > { %v2598_v56 = vadd.f32 %v2554_v7, %v2323_v61 }
 0x2b7   : > { %v2630_v41 = vmul.f32 0.23570226, %v2598_v56 }
 0x2b8   : > { %v2007_v55 = vpop.f32.mrf.mxu2 }
 0x2b9   : > { %v2666_v10 = vadd.f32 %v4436_v6, %v2630_v41  ;;  %v2049_v17 = vadd.f32 %v2007_v55, %v1771_v16  ;;  %v2282_v18 = vpop.f32.mrf.mxu3  ;;  %v1732_v31 = vpop.f32.mrf.mxu1 }
 0x2ba   : > { %v1772_v0 = vadd.f32 %v1732_v31, %v4386_v39 }
 0x2bb   : > { %2698 = vst [vmem:[%s4447_s9 + $0xd0] sm:$0xff] %v2666_v10  ;;  %v2324_v59 = vadd.f32 %v2282_v18, %v2049_v17 }
 0x2bc   : > { %v2560_v11 = vpop.f32.mrf.mxu0 }
 0x2bd   : > { %v2599_v28 = vadd.f32 %v2557_v57, %v2324_v59 }
 0x2bf   : > { %v2631_v62 = vmul.f32 0.23570226, %v2599_v28 }
 0x2c0   : > { %v2010_v52 = vpop.f32.mrf.mxu2 }
 0x2c1   : > { %v2667_v34 = vadd.f32 %v4436_v6, %v2631_v62  ;;  %v2050_v51 = vadd.f32 %v2010_v52, %v1772_v0  ;;  %v2285_v13 = vpop.f32.mrf.mxu3  ;;  %v1735_v25 = vpop.f32.mrf.mxu1 }
 0x2c2   : > { %v1773_v2 = vadd.f32 %v1735_v25, %v4397_v37 }
 0x2c3   : > { %2699 = vst [vmem:[%s4447_s9 + $0xd8] sm:$0xff] %v2667_v34  ;;  %v2325_v49 = vadd.f32 %v2285_v13, %v2050_v51 }
 0x2c4   : > { %v2563_v5 = vpop.f32.mrf.mxu0 }
 0x2c5   : > { %v2600_v50 = vadd.f32 %v2560_v11, %v2325_v49 }
 0x2c7   : > { %v2632_v58 = vmul.f32 0.23570226, %v2600_v50 }
 0x2c8   : > { %v2013_v63 = vpop.f32.mrf.mxu2 }
 0x2c9   : > { %v2668_v48 = vadd.f32 %v4436_v6, %v2632_v58  ;;  %v2051_v39 = vadd.f32 %v2013_v63, %v1773_v2  ;;  %v2288_v32 = vpop.f32.mrf.mxu3  ;;  %v1738_v47 = vpop.f32.mrf.mxu1 }
 0x2ca   : > { %v1774_v15 = vadd.f32 %v1738_v47, %v4408_v23 }
 0x2cb   : > { %2700 = vst [vmem:[%s4447_s9 + $0xe0] sm:$0xff] %v2668_v48  ;;  %v2326_v26 = vadd.f32 %v2288_v32, %v2051_v39 }
 0x2cc   : > { %v2566_v44 = vpop.f32.mrf.mxu0 }
 0x2cd   : > { %v2601_v9 = vadd.f32 %v2563_v5, %v2326_v26 }
 0x2cf   : > { %v2633_v22 = vmul.f32 0.23570226, %v2601_v9 }
 0x2d0   : > { %v2016_v38 = vpop.f32.mrf.mxu2 }
 0x2d1   : > { %v2669_v8 = vadd.f32 %v4436_v6, %v2633_v22  ;;  %v2052_v37 = vadd.f32 %v2016_v38, %v1774_v15  ;;  %v2291_v19 = vpop.f32.mrf.mxu3  ;;  %v1741_v30 = vpop.f32.mrf.mxu1 }
 0x2d2   : > { %v1775_v46 = vadd.f32 %v1741_v30, %v4419_v35 }
 0x2d3   : > { %2701 = vst [vmem:[%s4447_s9 + $0xe8] sm:$0xff] %v2669_v8  ;;  %v2327_v60 = vadd.f32 %v2291_v19, %v2052_v37 }
 0x2d4   : > { %v2569_v27 = vpop.f32.mrf.mxu0 }
 0x2d5   : > { %v2602_v4 = vadd.f32 %v2566_v44, %v2327_v60 }
 0x2d7   : > { %v2634_v42 = vmul.f32 0.23570226, %v2602_v4 }
 0x2d8   : > { %v2019_v14 = vpop.f32.mrf.mxu2 }
 0x2d9   : > { %v2670_v23 = vadd.f32 %v4436_v6, %v2634_v42  ;;  %v2053_v43 = vadd.f32 %v2019_v14, %v1775_v46  ;;  %v2294_v40 = vpop.f32.mrf.mxu3 }
 0x2db   : > { %2702 = vst [vmem:[%s4447_s9 + $0xf0] sm:$0xff] %v2670_v23  ;;  %v2328_v24 = vadd.f32 %v2294_v40, %v2053_v43 }
 0x2dd   : > { %v2603_v12 = vadd.f32 %v2569_v27, %v2328_v24 }
 0x2df   : > { %v2635_v35 = vmul.f32 0.23570226, %v2603_v12 }
 0x2e1   : > { %v2671_v33 = vadd.f32 %v4436_v6, %v2635_v35 }
 0x2e3   : > { %2703 = vst [vmem:[%s4447_s9 + $0xf8] sm:$0xff] %v2671_v33 }
 0x2e4   : > { %3396 = shalt.err (!%p3393_p5)
}
 0x2e5   : > { %s3449_s5 = smov 128   ;;  %s3450_s7 = smov 8  }
 0x2e6   : > { %3311 = dma.vmem_to_hbm [thread:$0]  (%p3511_p4), %s2721_s21, 4096, %s2723_s23, %s2705_s15, %s3449_s5, %s3449_s5, %s3450_s7  }
 0x2e7 PF: > { %p3317_p6 = scmp.ge.s32.totalorder %s3447_s17, 2  ;;  %s2737_s8 = sand.u32 1, %s3427_s12  }
 0x2e8   : > { %s2738_s9 = scalar_lea.sflag [#allocation3], %s2737_s8 }
 0x2e9   : > { %p3314_p7 = pnand %p3317_p6, %p3518_p8 }
 0x2eb   : > { %p3315_p9 = pneg %p3314_p7 }
 0x2ed   : > { %3422 = dma.done.wait (%p3315_p9), %s2738_s9, 4096  }
 0x2ee   : > { %3424 = vsyncadd (%p3315_p9), %s2738_s9, 4294963200  ;;  %s16_s17 = sadd.s32 1, %s3447_s17   ;;  %s4808_s12 = smov %s3431_s13 }
 0x2ef   : > { %p13_p10 = scmp.ge.s32.totalorder %s16_s17, 4   ;;  %s4809_s13 = smov %s3435_s14 }
 0x2f0   : > { %s4810_s14 = smov %s3524_s25  ;;  %s4811_s15 = smov %s3443_s16 }
 0x2f1   : > { %s4812_s16 = smov %s4814_s20  ;;  %15 = sbr.rel (!%p13_p10) target bundleno = 4 (0x4), region = 78 }
 0x2f6   :  { %2744 = vsyncpa [#allocation3], 1 }
 0x2f7   :  { %2746 = vsyncpa [#allocation3 + $0x1], 1 }

</bundles_post_ra>
